<compile_context>
chip_gen: v7x
topology: tpu7x:2x2x1
jax: 0.10.0
libtpu: 0.0.40
codegen_flags: <defaults>
</compile_context>

<pallas_src>
import functools
from typing import NamedTuple

import jax
import jax.numpy as jnp
from jax.experimental import pallas as pl
from jax.experimental.pallas import tpu as pltpu

LANE = 128


def _round_up(x, m):
    return ((x + m - 1) // m) * m


def _cdiv(a, b):
    return (a + b - 1) // b


class NeuralLMMeta(NamedTuple):
    vocab: int     # V
    context: int   # C
    hidden: int    # H
    group_w: int   # lanes per packed K group (multiple of 128)
    pack: int      # context positions packed per K group


class NeuralLMParams(NamedTuple):
    fused: jax.Array   # (K, HP)  rows = emb[v] @ w1[pos-block], packed layout
    b1: jax.Array      # (1, HP)
    w2: jax.Array      # (HP, VOP)
    b2: jax.Array      # (1, VOP)


def _neural_lm_kernel(tok_ref, fused_ref, b1_ref, w2_ref, b2_ref, out_ref,
                      *, vocab, group_w, pack):
    """Fused NeuralLM1 forward for one batch tile.

    tok_ref   : (TB, C)    int32  token ids for this batch tile
    fused_ref : (K,  HP)   f32    packed (embedding @ fc-weight) table
    b1_ref    : (1,  HP)   f32
    w2_ref    : (HP, VOP)  f32    out_layer weight (in, out), zero-padded
    b2_ref    : (1,  VOP)  f32
    out_ref   : (TB, VOP)  f32    padded logits (lane-dense store)
    """
    tok = tok_ref[...]                                   # (TB, C) int32
    TB, C = tok.shape
    K = fused_ref.shape[0]
    G = K // group_w

    # Hoisted: one lane-index iota shared by every K group / context position.
    lane = jax.lax.broadcasted_iota(jnp.int32, (TB, group_w), 1)

    # Packed one-hot: group g, slot p is hot at lane p*vocab + tok[:, g*pack+p].
    # All groups are concatenated along lanes into a single (TB, K) matrix so
    # the embedding+fc stage is ONE K=G*group_w MXU contraction.
    groups = []
    for g in range(G):                                   # static unroll, G small
        hit = None
        for p in range(pack):
            pos = g * pack + p
            if pos >= C:
                break
            h = lane == (tok[:, pos][:, None] + p * vocab)
            hit = h if hit is None else (hit | h)
        groups.append(hit.astype(jnp.float32))           # (TB, group_w)
    big_onehot = groups[0] if G == 1 else jnp.concatenate(groups, axis=-1)

    # Embedding + fc (+ReLU) in one MXU pass: one-hot rows are exact selectors,
    # so this equals ReLU(flat @ w1 + b1) up to f32 summation order.
    hidden = jnp.maximum(
        jnp.dot(big_onehot, fused_ref[...], preferred_element_type=jnp.float32)
        + b1_ref[...],
        0.0)                                             # (TB, HP)

    # out_layer: lane-dense (TB, VOP) store.
    out_ref[...] = (jnp.dot(hidden, w2_ref[...],
                            preferred_element_type=jnp.float32)
                    + b2_ref[...])


def precompute_params(emb_table, w1, b1, w2, b2, context_size):
    """One-time layout plumbing + weight fusion.  Cache the result across calls.

    w1 is stored (in, out) = (C*E, H) and w2 as (H, V); PyTorch stores (out, in)
    and applies x @ W.T — the math is identical.
    """
    V, E = emb_table.shape
    C = int(context_size)
    H = w1.shape[1]
    assert w1.shape == (C * E, H)
    assert b1.shape == (H,)
    assert w2.shape == (H, V)
    assert b2.shape == (V,)

    # Packing: fit as many context positions as possible into each 128-lane
    # K group (vocab=64 -> 2 per group, halving embedding-stage MACs).
    if V <= LANE:
        group_w = LANE
        pack = min(max(1, LANE // V), C)
    else:
        group_w = _round_up(V, LANE)
        pack = 1
    G = _cdiv(C, pack)
    K = G * group_w
    HP = _round_up(H, LANE)
    VOP = _round_up(V, LANE)

    f32 = jnp.float32
    emb_f = emb_table.astype(f32)
    w1_f = w1.astype(f32)

    # fused[g*group_w + p*V + v, :H] = emb[v] @ w1[pos*E:(pos+1)*E, :],
    # pos = g*pack + p; zeros elsewhere (unused lanes / padding).
    fused = jnp.zeros((K, HP), f32)
    for pos in range(C):
        g, p = divmod(pos, pack)
        row0 = g * group_w + p * V
        block = emb_f @ w1_f[pos * E:(pos + 1) * E, :]   # (V, H)
        fused = fused.at[row0:row0 + V, :H].set(block)

    b1_p = jnp.zeros((1, HP), f32).at[0, :H].set(b1.astype(f32))
    w2_p = jnp.zeros((HP, VOP), f32).at[:H, :V].set(w2.astype(f32))
    b2_p = jnp.zeros((1, VOP), f32).at[0, :V].set(b2.astype(f32))

    params = NeuralLMParams(fused=fused, b1=b1_p, w2=w2_p, b2=b2_p)
    meta = NeuralLMMeta(vocab=V, context=C, hidden=H, group_w=group_w, pack=pack)
    return params, meta


def _tensorcores_per_chip():
    try:
        kind = jax.devices()[0].device_kind.lower()
    except Exception:
        return 1
    return 2 if ("v7" in kind or "7x" in kind) else 1


def _pick_tile_b(B, n_cores, cap=512):
    """Batch tile: one big tile on 1-TC chips; an even >=2 tile grid on 2-TC."""
    BP8 = _round_up(max(B, 8), 8)
    if n_cores >= 2 and BP8 >= 16:
        tiles = max(2, 2 * _cdiv(BP8, 2 * cap))
        return _round_up(_cdiv(BP8, tiles), 8)
    return min(cap, BP8)


def _maybe_validate_tokens(tokens, vocab):
    # Packed one-hot lookup would alias an out-of-range id into the next slot
    # (PyTorch's nn.Embedding raises); validate eagerly when ids are concrete.
    try:
        lo = int(jnp.min(tokens))
        hi = int(jnp.max(tokens))
    except Exception:          # traced (inside jit/vmap) — skip the eager check
        return
    if lo < 0 or hi >= vocab:
        raise ValueError(f"token ids must lie in [0, {vocab}); got [{lo}, {hi}]")


@functools.partial(jax.jit, static_argnames=("meta", "tile_b"))
def _forward_impl(tokens, fused, b1, w2, b2, *, meta, tile_b):
    B, C = tokens.shape
    K, HP = fused.shape
    VOP = w2.shape[1]

    TB = tile_b
    BP = _round_up(B, TB)
    tok_p = jnp.zeros((BP, C), jnp.int32).at[:B].set(tokens.astype(jnp.int32))

    kernel = functools.partial(_neural_lm_kernel, vocab=meta.vocab,
                               group_w=meta.group_w, pack=meta.pack)

    out_p = pl.pallas_call(
        kernel,
        out_shape=jax.ShapeDtypeStruct((BP, VOP), jnp.float32),
        grid=(BP // TB,),
        in_specs=[
            pl.BlockSpec((TB, C), lambda i: (i, 0)),       # tokens (batch-tiled)
            pl.BlockSpec((K, HP), lambda i: (0, 0)),       # fused emb@w1 table
            pl.BlockSpec((1, HP), lambda i: (0, 0)),       # b1
            pl.BlockSpec((HP, VOP), lambda i: (0, 0)),     # w2
            pl.BlockSpec((1, VOP), lambda i: (0, 0)),      # b2
        ],
        out_specs=pl.BlockSpec((TB, VOP), lambda i: (i, 0)),
        compiler_params=pltpu.CompilerParams(
            dimension_semantics=("parallel",)),
    )(tok_p, fused, b1, w2, b2)

    return out_p[:B, :meta.vocab]


def neural_lm_forward(tokens, params, meta, *, tile_b=None):
    """NeuralLM1 forward. tokens (B, C) int -> logits (B, V) f32."""
    _maybe_validate_tokens(tokens, meta.vocab)
    if tile_b is None:
        tile_b = _pick_tile_b(tokens.shape[0], _tensorcores_per_chip())
    return _forward_impl(tokens, params.fused, params.b1, params.w2, params.b2,
                         meta=meta, tile_b=tile_b)


def neural_lm_reference(tokens, emb_table, w1, b1, w2, b2):
    """Plain-JAX reference replicating the PyTorch forward exactly."""
    emb = emb_table[tokens]                         # (B, C, E)
    flat = emb.reshape(emb.shape[0], -1)            # (B, C*E)
    hidden = jnp.maximum(flat @ w1 + b1, 0.0)       # ReLU(fc(flat))
    return hidden @ w2 + b2                         # out_layer(hidden)


if __name__ == "__main__":
    # Shapes consistent with NeuralLM1(vocab, embed, context, hidden_dim=128).
    vocab_size, embed_dim, context_size, hidden_dim = 64, 16, 8, 128
    batch = 200    # exercises batch padding and multi-tile path on 2-TC chips

    key = jax.random.PRNGKey(0)
    k_tok, k_emb, k_w1, k_b1, k_w2, k_b2 = jax.random.split(key, 6)

    tokens = jax.random.randint(k_tok, (batch, context_size), 0, vocab_size,
                                dtype=jnp.int32)

    # Deterministic parameter init (shapes from __init__; not a checkpoint load)
    emb_table = jax.random.normal(k_emb, (vocab_size, embed_dim), jnp.float32)
    fan_in1 = context_size * embed_dim
    bound1 = 1.0 / float(fan_in1) ** 0.5
    w1 = jax.random.uniform(k_w1, (fan_in1, hidden_dim), jnp.float32, -bound1, bound1)
    b1 = jax.random.uniform(k_b1, (hidden_dim,), jnp.float32, -bound1, bound1)
    bound2 = 1.0 / float(hidden_dim) ** 0.5
    w2 = jax.random.uniform(k_w2, (hidden_dim, vocab_size), jnp.float32, -bound2, bound2)
    b2 = jax.random.uniform(k_b2, (vocab_size,), jnp.float32, -bound2, bound2)

    # One-time fusion / padding (cached; not on the per-call path).
    params, meta = precompute_params(emb_table, w1, b1, w2, b2, context_size)
    params = jax.tree_util.tree_map(jax.block_until_ready, params)

    logits = neural_lm_forward(tokens, params, meta)
    logits = jax.block_until_ready(logits)

    ref = neural_lm_reference(tokens, emb_table, w1, b1, w2, b2)
    assert logits.shape == (batch, vocab_size)
    assert jnp.allclose(logits, ref, atol=2e-4, rtol=2e-4), "mismatch vs reference"

    print("KERNEL_OK")
</pallas_src>

<mosaic_0001>
module attributes {stable_mosaic.version = 11 : i64} {
  func.func @_neural_lm_kernel(%arg0: i32, %arg1: memref<200x8xi32, #tpu.memory_space<vmem>>, %arg2: memref<512x128xf32, #tpu.memory_space<vmem>>, %arg3: memref<1x128xf32, #tpu.memory_space<vmem>>, %arg4: memref<128x128xf32, #tpu.memory_space<vmem>>, %arg5: memref<1x128xf32, #tpu.memory_space<vmem>>, %arg6: memref<200x128xf32, #tpu.memory_space<vmem>>) attributes {dimension_semantics = [#tpu.dimension_semantics<parallel>], iteration_bounds = array<i64: 1>, scalar_prefetch = 0 : i64, scratch_operands = 0 : i64, tpu.core_type = #tpu.core_type<tc>, window_params = [{transform_indices = @transform_0, window_bounds = array<i64: 200, 8>}, {pipeline_mode = #tpu.pipeline_mode<synchronous>, transform_indices = @transform_1, window_bounds = array<i64: 512, 128>}, {pipeline_mode = #tpu.pipeline_mode<synchronous>, transform_indices = @transform_2, window_bounds = array<i64: 1, 128>}, {pipeline_mode = #tpu.pipeline_mode<synchronous>, transform_indices = @transform_3, window_bounds = array<i64: 128, 128>}, {pipeline_mode = #tpu.pipeline_mode<synchronous>, transform_indices = @transform_4, window_bounds = array<i64: 1, 128>}, {transform_indices = @transform_5, window_bounds = array<i64: 200, 128>}]} {
    %c0 = arith.constant 0 : index
    %c0_0 = arith.constant 0 : index
    %0 = vector.load %arg1[%c0, %c0_0] : memref<200x8xi32, #tpu.memory_space<vmem>>, vector<200x8xi32>
    %1 = tpu.iota {dimensions = array<i32: 1>} : vector<200x128xi32>
    %2 = vector.extract_strided_slice %0 {offsets = [0, 0], sizes = [200, 1], strides = [1, 1]} : vector<200x8xi32> to vector<200x1xi32>
    %3 = vector.shape_cast %2 : vector<200x1xi32> to vector<200xi32>
    %4 = vector.shape_cast %3 : vector<200xi32> to vector<200x1xi32>
    %c0_i32 = arith.constant 0 : i32
    %5 = vector.broadcast %c0_i32 : i32 to vector<200x1xi32>
    %6 = arith.addi %4, %5 : vector<200x1xi32>
    %7 = vector.broadcast %6 : vector<200x1xi32> to vector<200x128xi32>
    %8 = arith.cmpi eq, %1, %7 : vector<200x128xi32>
    %9 = vector.extract_strided_slice %0 {offsets = [0, 1], sizes = [200, 1], strides = [1, 1]} : vector<200x8xi32> to vector<200x1xi32>
    %10 = vector.shape_cast %9 : vector<200x1xi32> to vector<200xi32>
    %11 = vector.shape_cast %10 : vector<200xi32> to vector<200x1xi32>
    %c64_i32 = arith.constant 64 : i32
    %12 = vector.broadcast %c64_i32 : i32 to vector<200x1xi32>
    %13 = arith.addi %11, %12 : vector<200x1xi32>
    %14 = vector.broadcast %13 : vector<200x1xi32> to vector<200x128xi32>
    %15 = arith.cmpi eq, %1, %14 : vector<200x128xi32>
    %16 = arith.ori %8, %15 : vector<200x128xi1>
    %17 = arith.extui %16 : vector<200x128xi1> to vector<200x128xi32>
    %18 = arith.sitofp %17 : vector<200x128xi32> to vector<200x128xf32>
    %19 = vector.extract_strided_slice %0 {offsets = [0, 2], sizes = [200, 1], strides = [1, 1]} : vector<200x8xi32> to vector<200x1xi32>
    %20 = vector.shape_cast %19 : vector<200x1xi32> to vector<200xi32>
    %21 = vector.shape_cast %20 : vector<200xi32> to vector<200x1xi32>
    %c0_i32_1 = arith.constant 0 : i32
    %22 = vector.broadcast %c0_i32_1 : i32 to vector<200x1xi32>
    %23 = arith.addi %21, %22 : vector<200x1xi32>
    %24 = vector.broadcast %23 : vector<200x1xi32> to vector<200x128xi32>
    %25 = arith.cmpi eq, %1, %24 : vector<200x128xi32>
    %26 = vector.extract_strided_slice %0 {offsets = [0, 3], sizes = [200, 1], strides = [1, 1]} : vector<200x8xi32> to vector<200x1xi32>
    %27 = vector.shape_cast %26 : vector<200x1xi32> to vector<200xi32>
    %28 = vector.shape_cast %27 : vector<200xi32> to vector<200x1xi32>
    %c64_i32_2 = arith.constant 64 : i32
    %29 = vector.broadcast %c64_i32_2 : i32 to vector<200x1xi32>
    %30 = arith.addi %28, %29 : vector<200x1xi32>
    %31 = vector.broadcast %30 : vector<200x1xi32> to vector<200x128xi32>
    %32 = arith.cmpi eq, %1, %31 : vector<200x128xi32>
    %33 = arith.ori %25, %32 : vector<200x128xi1>
    %34 = arith.extui %33 : vector<200x128xi1> to vector<200x128xi32>
    %35 = arith.sitofp %34 : vector<200x128xi32> to vector<200x128xf32>
    %36 = vector.extract_strided_slice %0 {offsets = [0, 4], sizes = [200, 1], strides = [1, 1]} : vector<200x8xi32> to vector<200x1xi32>
    %37 = vector.shape_cast %36 : vector<200x1xi32> to vector<200xi32>
    %38 = vector.shape_cast %37 : vector<200xi32> to vector<200x1xi32>
    %c0_i32_3 = arith.constant 0 : i32
    %39 = vector.broadcast %c0_i32_3 : i32 to vector<200x1xi32>
    %40 = arith.addi %38, %39 : vector<200x1xi32>
    %41 = vector.broadcast %40 : vector<200x1xi32> to vector<200x128xi32>
    %42 = arith.cmpi eq, %1, %41 : vector<200x128xi32>
    %43 = vector.extract_strided_slice %0 {offsets = [0, 5], sizes = [200, 1], strides = [1, 1]} : vector<200x8xi32> to vector<200x1xi32>
    %44 = vector.shape_cast %43 : vector<200x1xi32> to vector<200xi32>
    %45 = vector.shape_cast %44 : vector<200xi32> to vector<200x1xi32>
    %c64_i32_4 = arith.constant 64 : i32
    %46 = vector.broadcast %c64_i32_4 : i32 to vector<200x1xi32>
    %47 = arith.addi %45, %46 : vector<200x1xi32>
    %48 = vector.broadcast %47 : vector<200x1xi32> to vector<200x128xi32>
    %49 = arith.cmpi eq, %1, %48 : vector<200x128xi32>
    %50 = arith.ori %42, %49 : vector<200x128xi1>
    %51 = arith.extui %50 : vector<200x128xi1> to vector<200x128xi32>
    %52 = arith.sitofp %51 : vector<200x128xi32> to vector<200x128xf32>
    %53 = vector.extract_strided_slice %0 {offsets = [0, 6], sizes = [200, 1], strides = [1, 1]} : vector<200x8xi32> to vector<200x1xi32>
    %54 = vector.shape_cast %53 : vector<200x1xi32> to vector<200xi32>
    %55 = vector.shape_cast %54 : vector<200xi32> to vector<200x1xi32>
    %c0_i32_5 = arith.constant 0 : i32
    %56 = vector.broadcast %c0_i32_5 : i32 to vector<200x1xi32>
    %57 = arith.addi %55, %56 : vector<200x1xi32>
    %58 = vector.broadcast %57 : vector<200x1xi32> to vector<200x128xi32>
    %59 = arith.cmpi eq, %1, %58 : vector<200x128xi32>
    %60 = vector.extract_strided_slice %0 {offsets = [0, 7], sizes = [200, 1], strides = [1, 1]} : vector<200x8xi32> to vector<200x1xi32>
    %61 = vector.shape_cast %60 : vector<200x1xi32> to vector<200xi32>
    %62 = vector.shape_cast %61 : vector<200xi32> to vector<200x1xi32>
    %c64_i32_6 = arith.constant 64 : i32
    %63 = vector.broadcast %c64_i32_6 : i32 to vector<200x1xi32>
    %64 = arith.addi %62, %63 : vector<200x1xi32>
    %65 = vector.broadcast %64 : vector<200x1xi32> to vector<200x128xi32>
    %66 = arith.cmpi eq, %1, %65 : vector<200x128xi32>
    %67 = arith.ori %59, %66 : vector<200x128xi1>
    %68 = arith.extui %67 : vector<200x128xi1> to vector<200x128xi32>
    %69 = arith.sitofp %68 : vector<200x128xi32> to vector<200x128xf32>
    %70 = tpu.concatenate %18, %35, %52, %69 in 1 : vector<200x128xf32>, vector<200x128xf32>, vector<200x128xf32>, vector<200x128xf32> -> vector<200x512xf32>
    %c0_7 = arith.constant 0 : index
    %c0_8 = arith.constant 0 : index
    %71 = vector.load %arg2[%c0_7, %c0_8] : memref<512x128xf32, #tpu.memory_space<vmem>>, vector<512x128xf32>
    %cst = arith.constant dense<0.000000e+00> : vector<200x128xf32>
    %72 = tpu.matmul %70, %71, %cst {dimension_numbers = #tpu.dot_dimension_numbers<[1], [0], [0], [1], [0, 0, 1, 1], [], []>} : vector<200x512xf32>, vector<512x128xf32>, vector<200x128xf32> -> vector<200x128xf32>
    %c0_9 = arith.constant 0 : index
    %c0_10 = arith.constant 0 : index
    %73 = vector.load %arg3[%c0_9, %c0_10] : memref<1x128xf32, #tpu.memory_space<vmem>>, vector<1x128xf32>
    %74 = vector.broadcast %73 : vector<1x128xf32> to vector<200x128xf32>
    %75 = arith.addf %72, %74 : vector<200x128xf32>
    %cst_11 = arith.constant 0.000000e+00 : f32
    %76 = vector.broadcast %cst_11 : f32 to vector<200x128xf32>
    %77 = arith.maximumf %75, %76 : vector<200x128xf32>
    %c0_12 = arith.constant 0 : index
    %c0_13 = arith.constant 0 : index
    %78 = vector.load %arg4[%c0_12, %c0_13] : memref<128x128xf32, #tpu.memory_space<vmem>>, vector<128x128xf32>
    %cst_14 = arith.constant dense<0.000000e+00> : vector<200x128xf32>
    %79 = tpu.matmul %77, %78, %cst_14 {dimension_numbers = #tpu.dot_dimension_numbers<[1], [0], [0], [1], [0, 0, 1, 1], [], []>} : vector<200x128xf32>, vector<128x128xf32>, vector<200x128xf32> -> vector<200x128xf32>
    %c0_15 = arith.constant 0 : index
    %c0_16 = arith.constant 0 : index
    %80 = vector.load %arg5[%c0_15, %c0_16] : memref<1x128xf32, #tpu.memory_space<vmem>>, vector<1x128xf32>
    %81 = vector.broadcast %80 : vector<1x128xf32> to vector<200x128xf32>
    %82 = arith.addf %79, %81 : vector<200x128xf32>
    %c0_17 = arith.constant 0 : index
    %c0_18 = arith.constant 0 : index
    %83 = vector.load %arg6[%c0_17, %c0_18] : memref<200x128xf32, #tpu.memory_space<vmem>>, vector<200x128xf32>
    tpu.vector_store %arg6[%c0_17, %c0_18], %82 {strides = array<i32>} : memref<200x128xf32, #tpu.memory_space<vmem>>, vector<200x128xf32>,
    return
  }
  func.func @transform_0(%arg0: i32) -> (i32, i32) {
    %c0_i32 = arith.constant 0 : i32
    %c0_i32_0 = arith.constant 0 : i32
    return %arg0, %c0_i32 : i32, i32
  }
  func.func @transform_1(%arg0: i32) -> (i32, i32) {
    %c0_i32 = arith.constant 0 : i32
    %c0_i32_0 = arith.constant 0 : i32
    %c0_i32_1 = arith.constant 0 : i32
    return %c0_i32, %c0_i32_0 : i32, i32
  }
  func.func @transform_2(%arg0: i32) -> (i32, i32) {
    %c0_i32 = arith.constant 0 : i32
    %c0_i32_0 = arith.constant 0 : i32
    %c0_i32_1 = arith.constant 0 : i32
    return %c0_i32, %c0_i32_0 : i32, i32
  }
  func.func @transform_3(%arg0: i32) -> (i32, i32) {
    %c0_i32 = arith.constant 0 : i32
    %c0_i32_0 = arith.constant 0 : i32
    %c0_i32_1 = arith.constant 0 : i32
    return %c0_i32, %c0_i32_0 : i32, i32
  }
  func.func @transform_4(%arg0: i32) -> (i32, i32) {
    %c0_i32 = arith.constant 0 : i32
    %c0_i32_0 = arith.constant 0 : i32
    %c0_i32_1 = arith.constant 0 : i32
    return %c0_i32, %c0_i32_0 : i32, i32
  }
  func.func @transform_5(%arg0: i32) -> (i32, i32) {
    %c0_i32 = arith.constant 0 : i32
    %c0_i32_0 = arith.constant 0 : i32
    return %arg0, %c0_i32 : i32, i32
  }
}

</mosaic_0001>

<bundles_post_ra>
// kernel: _forward_impl.1
= control target key start
LH: loop header
LB: loop body
LE: loop exit
PB: predicated region body
PF: predicated region fallthrough
CT: control target
= control target key end

     0   :  { %10 = vsyncpa [#allocation3], 0  ;;  %s2661_s18 = smov [#allocation2]   ;;  %s4217_s0 = inlined_call_operand.vmem [shape: s32[200,8], index: 0, kind: input, shape index: {}]   ;;  %s4218_s1 = inlined_call_operand.hbm [shape: f32[512,128], index: 1, kind: input, shape index: {}]   ;;  %s4219_s2 = inlined_call_operand.vmem [shape: f32[1,128], index: 2, kind: input, shape index: {}]   ;;  %s4220_s3 = inlined_call_operand.vmem [shape: f32[128,128], index: 3, kind: input, shape index: {}]   ;;  %s4221_s4 = inlined_call_operand.vmem [shape: f32[1,128], index: 4, kind: input, shape index: {}]   ;;  %s4222_s5 = inlined_call_operand.vmem [shape: f32[200,128], index: 5, kind: output, shape index: {}]  }
   0x1   :  { %s18_s19 = sshll.u32 %s2661_s18, 4  ;;  %s2637_s22 = scalar_lea.hbm %s4218_s1, 8192  ;;  %s19_s19 = int_to_ptr.vmem [resolvable:$true] %s18_s19 }
   0x2   :  { %p2638_p0 = scmp.ne.s32.totalorder %s4218_s1, %s2637_s22  ;;  %p2641_p1 = scmp.lt.u32.totalorder %s2637_s22, %s4218_s1 }
   0x4   :  { %p2643_p2 = pnand %p2641_p1, %p2638_p0 }
   0x6   :  { %2646 = shalt.err (!%p2643_p2)
}
   0x7   :  { %s2647_s27 = scalar_lea.vmem %s19_s19, 8192  ;;  %p2652_p4 = scmp.lt.s32.totalorder %s19_s19, %s19_s19 }
   0x8   :  { %p2648_p3 = scmp.ne.s32.totalorder %s19_s19, %s2647_s27  ;;  %p2653_p5 = scmp.lt.s32.totalorder %s2647_s27, %s2647_s27 }
   0xa   :  { %p2654_p6 = por %p2653_p5, %p2652_p4 }
   0xc   :  { %p2655_p7 = pnand %p2654_p6, %p2648_p3 }
   0xe   :  { %2658 = shalt.err (!%p2655_p7)
}
   0xf   :  { %s2662_s28 = smov 128   ;;  %s2663_s29 = smov 8  }
  0x10   :  { %24 = dma.hbm_to_vmem [thread:$0]  %s4218_s1, 8192, %s19_s19, [#allocation3], %s2662_s28, %s2662_s28, %s2663_s29  }
  0x11   :  { %2659 = dma.done.wait [#allocation3], 8192  }
  0x12   :  { %2660 = vsyncadd [#allocation3], 4294959104  ;;  %v2664_v0 = vmov 0   ;;  %v4223_v1 = vmov 0.0|0.0   ;;  %v2723_v2 = vld [vmem:[%s4217_s0 + $0x10] sm:$0xff]  ;;  %v2728_v3 = vld [vmem:[%s4217_s0] sm:$0xff] }
  0x13   :  { %2486 = vset.pattern.permute.xlu1 %v2664_v0  ;;  %2485 = vset.pattern.permute.xlu0 %v2664_v0  ;;  %v2735_v4 = vld [vmem:[%s4217_s0 + $0x18] sm:$0xff]  ;;  %v2740_v5 = vld [vmem:[%s4217_s0 + $0x8] sm:$0xff]  ;;  %v2752_v7 = vld [vmem:[%s4217_s0 + $0x20] sm:$0xff]  ;;  %v2879_v59 = vadd.s32 64, %v2728_v3  ;;  %v4233_v63 = vmov 1  }
  0x14   :  { %2255 = vmatprep.subr.bf16.mxu0 %v4223_v1  ;;  %2375 = vmatprep.subr.bf16.mxu1 %v4223_v1  ;;  %v2747_v6 = vld [vmem:[%s4217_s0 + $0x28] sm:$0xff]  ;;  %v1186_v8 = vld [vmem:[#allocation2] sm:$0xff]  ;;  %v1188_v11 = vld [vmem:[#allocation2 + $0x10] sm:$0xff]  ;;  %v2886_v0 = vadd.s32 64, %v2740_v5 }
  0x15   :  { %68 = vperm.xlu1 %2486, %v2723_v2   ;;  %62 = vperm.xlu0 %2485, %v2728_v3   ;;  %v1187_v9 = vld [vmem:[#allocation2 + $0x8] sm:$0xff]  ;;  %v1189_v12 = vld [vmem:[#allocation2 + $0x18] sm:$0xff]  ;;  %v2764_v14 = vld [vmem:[%s4217_s0 + $0x30] sm:$0xff] }
  0x16   :  { %v2256_v10 = vpack.c.bf16 %v1187_v9, %v1186_v8  ;;  %v2759_v13 = vld [vmem:[%s4217_s0 + $0x38] sm:$0xff]  ;;  %v2259_v15 = vpack.c.bf16 %v1189_v12, %v1188_v11  ;;  %v1190_v16 = vld [vmem:[#allocation2 + $0x20] sm:$0xff]  ;;  %v1191_v17 = vld [vmem:[#allocation2 + $0x28] sm:$0xff]  ;;  %v4235_v11 = vmov 2   ;;  %v2893_v12 = vadd.s32 64, %v2747_v6 }
  0x17   :  { %v2772_v18 = vld [vmem:[%s4217_s0 + $0x48] sm:$0xff]  ;;  %v2777_v19 = vld [vmem:[%s4217_s0 + $0x40] sm:$0xff]  ;;  %v2262_v20 = vpack.c.bf16 %v1191_v17, %v1190_v16  ;;  %v1192_v21 = vld [vmem:[#allocation2 + $0x30] sm:$0xff] }
  0x18   :  { %2257 = vmatpush1.bf16.msra.mxu0 %v2256_v10  ;;  %v1193_v22 = vld [vmem:[#allocation2 + $0x38] sm:$0xff]  ;;  %v2790_v24 = vld [vmem:[%s4217_s0 + $0x50] sm:$0xff]  ;;  %v1194_v26 = vld [vmem:[#allocation2 + $0x40] sm:$0xff]  ;;  %4263 = vst [vmem:[#allocation5_spill] sm:$0xff] %v2893_v12 }
  0x19   :  { %71 = vperm.xlu1 %2486, %v2735_v4   ;;  %65 = vperm.xlu0 %2485, %v2740_v5   ;;  %v2785_v23 = vld [vmem:[%s4217_s0 + $0x58] sm:$0xff]  ;;  %v2265_v25 = vpack.c.bf16 %v1193_v22, %v1192_v21  ;;  %v1195_v27 = vld [vmem:[#allocation2 + $0x48] sm:$0xff]  ;;  %v2803_v29 = vld [vmem:[%s4217_s0 + $0x60] sm:$0xff]  ;;  %v4225_v21 = vmov 3  }
  0x1a   :  { %2258 = vmatprep.subr.bf16.mxu0 %v4223_v1  ;;  %v2798_v28 = vld [vmem:[%s4217_s0 + $0x68] sm:$0xff]  ;;  %v2268_v30 = vpack.c.bf16 %v1195_v27, %v1194_v26  ;;  %v1196_v31 = vld [vmem:[#allocation2 + $0x50] sm:$0xff]  ;;  %v1197_v32 = vld [vmem:[#allocation2 + $0x58] sm:$0xff]  ;;  %v2906_v27 = vadd.s32 64, %v2790_v24 }
  0x1b   :  { %v2811_v33 = vld [vmem:[%s4217_s0 + $0x78] sm:$0xff]  ;;  %v2816_v34 = vld [vmem:[%s4217_s0 + $0x70] sm:$0xff]  ;;  %v2271_v35 = vpack.c.bf16 %v1197_v32, %v1196_v31  ;;  %v1198_v36 = vld [vmem:[#allocation2 + $0x60] sm:$0xff] }
  0x1c   :  { %2260 = vmatpush1.bf16.msra.mxu0 %v2259_v15  ;;  %v1199_v37 = vld [vmem:[#allocation2 + $0x68] sm:$0xff]  ;;  %v2829_v39 = vld [vmem:[%s4217_s0 + $0x80] sm:$0xff]  ;;  %v1200_v41 = vld [vmem:[#allocation2 + $0x70] sm:$0xff]  ;;  %4265 = vst [vmem:[#allocation7_spill] sm:$0xff] %v2906_v27 }
  0x1d   :  { %77 = vperm.xlu1 %2486, %v2747_v6   ;;  %74 = vperm.xlu0 %2485, %v2752_v7   ;;  %v2824_v38 = vld [vmem:[%s4217_s0 + $0x88] sm:$0xff]  ;;  %v2274_v40 = vpack.c.bf16 %v1199_v37, %v1198_v36  ;;  %v1201_v42 = vld [vmem:[#allocation2 + $0x78] sm:$0xff]  ;;  %v2842_v44 = vld [vmem:[%s4217_s0 + $0x90] sm:$0xff]  ;;  %v2919_v37 = vadd.s32 64, %v2811_v33 }
  0x1e   :  { %2261 = vmatprep.subr.bf16.mxu0 %v4223_v1  ;;  %v2837_v43 = vld [vmem:[%s4217_s0 + $0x98] sm:$0xff]  ;;  %v2277_v45 = vpack.c.bf16 %v1201_v42, %v1200_v41  ;;  %v1202_v46 = vld [vmem:[#allocation2 + $0x80] sm:$0xff]  ;;  %v1203_v47 = vld [vmem:[#allocation2 + $0x88] sm:$0xff]  ;;  %v2929_v41 = vadd.s32 64, %v2829_v39 }
  0x1f   :  { %v2850_v48 = vld [vmem:[%s4217_s0 + $0xa8] sm:$0xff]  ;;  %v2855_v49 = vld [vmem:[%s4217_s0 + $0xa0] sm:$0xff]  ;;  %v2280_v50 = vpack.c.bf16 %v1203_v47, %v1202_v46  ;;  %v1204_v51 = vld [vmem:[#allocation2 + $0x90] sm:$0xff]  ;;  %v2947_v46 = vadd.s32 64, %v2752_v7  ;;  %v2958_v47 = vadd.s32 64, %v2759_v13 }
  0x20   :  { %2263 = vmatpush1.bf16.msra.mxu0 %v2262_v20  ;;  %v1205_v52 = vld [vmem:[#allocation2 + $0x98] sm:$0xff]  ;;  %v2868_v54 = vld [vmem:[%s4217_s0 + $0xb0] sm:$0xff]  ;;  %v1206_v56 = vld [vmem:[#allocation2 + $0xa0] sm:$0xff]  ;;  %v2899_v20 = vadd.s32 64, %v2764_v14  ;;  %4268 = vst [vmem:[#allocation10_spill] sm:$0xff] %v2929_v41  ;;  %v2934_v42 = vadd.s32 64, %v2855_v49 }
  0x21   :  { %83 = vperm.xlu1 %2486, %v2759_v13   ;;  %80 = vperm.xlu0 %2485, %v2764_v14   ;;  %v2863_v53 = vld [vmem:[%s4217_s0 + $0xb8] sm:$0xff]  ;;  %v2283_v55 = vpack.c.bf16 %v1205_v52, %v1204_v51  ;;  %v1207_v57 = vld [vmem:[#allocation2 + $0xa8] sm:$0xff]  ;;  %v2876_v58 = vld [vmem:[%s4217_s0 + $0xc0] sm:$0xff]  ;;  %4271 = vst [vmem:[#allocation13_spill] sm:$0xff] %v2947_v46  ;;  %v2969_v51 = vadd.s32 64, %v2803_v29  ;;  %v2974_v52 = vadd.s32 64, %v2798_v28 }
  0x22   :  { %2264 = vmatprep.subr.bf16.mxu0 %v4223_v1  ;;  %v2286_v60 = vpack.c.bf16 %v1207_v57, %v1206_v56  ;;  %v1208_v61 = vld [vmem:[#allocation2 + $0xb0] sm:$0xff]  ;;  %v1209_v62 = vld [vmem:[#allocation2 + $0xb8] sm:$0xff]  ;;  %v1210_v9 = vld [vmem:[#allocation2 + $0xc0] sm:$0xff]  ;;  %4264 = vst [vmem:[#allocation6_spill] sm:$0xff] %v2899_v20  ;;  %v2986_v56 = vadd.s32 64, %v2842_v44  ;;  %v2992_v57 = vadd.s32 64, %v2868_v54 }
  0x23   :  { %v2289_v8 = vpack.c.bf16 %v1209_v62, %v1208_v61  ;;  %v1211_v10 = vld [vmem:[#allocation2 + $0xc8] sm:$0xff]  ;;  %v1212_v16 = vld [vmem:[#allocation2 + $0xd0] sm:$0xff]  ;;  %v1213_v17 = vld [vmem:[#allocation2 + $0xd8] sm:$0xff]  ;;  %4269 = vst [vmem:[#allocation11_spill] sm:$0xff] %v2934_v42 }
  0x24   :  { %2266 = vmatpush1.bf16.msra.mxu0 %v2265_v25  ;;  %v2292_v15 = vpack.c.bf16 %v1211_v10, %v1210_v9  ;;  %v2295_v22 = vpack.c.bf16 %v1213_v17, %v1212_v16  ;;  %v1214_v25 = vld [vmem:[#allocation2 + $0xe0] sm:$0xff]  ;;  %v1215_v26 = vld [vmem:[#allocation2 + $0xe8] sm:$0xff]  ;;  %v1216_v31 = vld [vmem:[#allocation2 + $0xf0] sm:$0xff]  ;;  %4272 = vst [vmem:[#allocation14_spill] sm:$0xff] %v2958_v47 }
  0x25   :  { %89 = vperm.xlu1 %2486, %v2772_v18   ;;  %86 = vperm.xlu0 %2485, %v2777_v19   ;;  %v1217_v32 = vld [vmem:[#allocation2 + $0xf8] sm:$0xff]  ;;  %4274 = vst [vmem:[#allocation16_spill] sm:$0xff] %v2974_v52 }
  0x26   :  { %2267 = vmatprep.subr.bf16.mxu0 %v4223_v1  ;;  %v2301_v36 = vpack.c.bf16 %v1217_v32, %v1216_v31 }
  0x28   :  { %2269 = vmatpush1.bf16.msra.mxu0 %v2268_v30  ;;  %v2298_v30 = vpack.c.bf16 %v1215_v26, %v1214_v25 }
  0x29   :  { %95 = vperm.xlu1 %2486, %v2785_v23   ;;  %92 = vperm.xlu0 %2485, %v2790_v24  }
  0x2a   :  { %2270 = vmatprep.subr.bf16.mxu0 %v4223_v1 }
  0x2c   :  { %2272 = vmatpush1.bf16.msra.mxu0 %v2271_v35  ;;  %v2912_v35 = vadd.s32 64, %v2785_v23 }
  0x2d   :  { %101 = vperm.xlu1 %2486, %v2798_v28   ;;  %98 = vperm.xlu0 %2485, %v2803_v29  }
  0x2e   :  { %2273 = vmatprep.subr.bf16.mxu0 %v4223_v1  ;;  %4266 = vst [vmem:[#allocation8_spill] sm:$0xff] %v2912_v35 }
  0x30   :  { %2275 = vmatpush1.bf16.msra.mxu0 %v2274_v40  ;;  %v2922_v40 = vadd.s32 64, %v2723_v2 }
  0x31   :  { %107 = vperm.xlu1 %2486, %v2811_v33   ;;  %104 = vperm.xlu0 %2485, %v2816_v34  }
  0x32   :  { %2276 = vmatprep.subr.bf16.mxu0 %v4223_v1  ;;  %4267 = vst [vmem:[#allocation9_spill] sm:$0xff] %v2922_v40 }
  0x34   :  { %2278 = vmatpush1.bf16.msra.mxu0 %v2277_v45  ;;  %v2942_v45 = vadd.s32 64, %v2850_v48 }
  0x35   :  { %113 = vperm.xlu1 %2486, %v2824_v38   ;;  %110 = vperm.xlu0 %2485, %v2829_v39  }
  0x36   :  { %2279 = vmatprep.subr.bf16.mxu0 %v4223_v1 }
  0x38   :  { %2281 = vmatpush1.bf16.msra.mxu0 %v2280_v50  ;;  %v2964_v50 = vadd.s32 64, %v2777_v19 }
  0x39   :  { %119 = vperm.xlu1 %2486, %v2837_v43   ;;  %116 = vperm.xlu0 %2485, %v2842_v44  }
  0x3a   :  { %2282 = vmatprep.subr.bf16.mxu0 %v4223_v1  ;;  %4273 = vst [vmem:[#allocation15_spill] sm:$0xff] %v2964_v50 }
  0x3c   :  { %2284 = vmatpush1.bf16.msra.mxu0 %v2283_v55  ;;  %v2980_v55 = vadd.s32 64, %v2824_v38 }
  0x3d   :  { %125 = vperm.xlu1 %2486, %v2850_v48   ;;  %122 = vperm.xlu0 %2485, %v2855_v49  }
  0x3e   :  { %2285 = vmatprep.subr.bf16.mxu0 %v4223_v1  ;;  %4275 = vst [vmem:[#allocation17_spill] sm:$0xff] %v2980_v55 }
  0x40   :  { %2287 = vmatpush1.bf16.msra.mxu0 %v2286_v60  ;;  %v2997_v60 = vadd.s32 64, %v2863_v53 }
  0x41   :  { %131 = vperm.xlu1 %2486, %v2863_v53   ;;  %128 = vperm.xlu0 %2485, %v2868_v54  }
  0x42   :  { %2288 = vmatprep.subr.bf16.mxu0 %v4223_v1 }
  0x44   :  { %2290 = vmatpush1.bf16.msra.mxu0 %v2289_v8  ;;  %v3008_v8 = vadd.s32 64, %v2772_v18 }
  0x45   :  { %2487 = vset.pattern.permute.xlu1 %v4233_v63  ;;  %134 = vperm.xlu0 %2485, %v2876_v58  }
  0x46   :  { %187 = vperm.xlu1 %2487, %v2879_v59   ;;  %2291 = vmatprep.subr.bf16.mxu0 %v4223_v1 }
  0x48   :  { %2293 = vmatpush1.bf16.msra.mxu0 %v2292_v15 }
  0x49   :  { %2488 = vset.pattern.permute.xlu0 %v4233_v63  ;;  %2294 = vmatprep.subr.bf16.mxu0 %v4223_v1 }
  0x4a   :  { %190 = vperm.xlu0 %2488, %v2886_v0   ;;  %2489 = vset.pattern.permute.xlu1 %v4235_v11 }
  0x4b   :  { %362 = vperm.xlu1 %2489, %v2728_v3  }
  0x4c   :  { %2296 = vmatpush1.bf16.msra.mxu0 %v2295_v22 }
  0x4d   :  { %2297 = vmatprep.subr.bf16.mxu0 %v4223_v1 }
  0x4e   :  { %202 = vperm.xlu0 %2488, %v2893_v12  }
  0x4f   :  { %2490 = vset.pattern.permute.xlu1 %v4225_v21 }
  0x50   :  { %462 = vperm.xlu1 %2490, %v2879_v59   ;;  %2299 = vmatpush1.bf16.msra.mxu0 %v2298_v30 }
  0x51   :  { %2300 = vmatprep.subr.bf16.mxu0 %v4223_v1 }
  0x52   :  { %205 = vperm.xlu0 %2488, %v2899_v20  }
  0x54   :  { %465 = vperm.xlu1 %2490, %v2886_v0   ;;  %2302 = vmatpush1.bf16.msra.mxu0 %v2301_v36 }
  0x55   :  { %2303 = vmatprep.subr.bf16.mxu0 %v4223_v1 }
  0x56   :  { %217 = vperm.xlu0 %2488, %v2906_v27  }
  0x58   :  { %2491 = vset.pattern.permute.xlu1 %v4235_v11 }
  0x59   :  { %368 = vperm.xlu1 %2491, %v2723_v2   ;;  %v2938_v2 = vadd.s32 64, %v2735_v4 }
  0x5a   :  { %220 = vperm.xlu0 %2488, %v2912_v35  }
  0x5b   :  { %4270 = vst [vmem:[#allocation12_spill] sm:$0xff] %v2938_v2 }
  0x5d   :  { %2492 = vset.pattern.permute.xlu1 %v4233_v63 }
  0x5e   :  { %232 = vperm.xlu0 %2488, %v2919_v37   ;;  %193 = vperm.xlu1 %2492, %v2922_v40  }
  0x62   :  { %235 = vperm.xlu0 %2488, %v2929_v41   ;;  %2493 = vset.pattern.permute.xlu1 %v4235_v11 }
  0x63   :  { %371 = vperm.xlu1 %2493, %v2735_v4  }
  0x66   :  { %247 = vperm.xlu0 %2488, %v2934_v42  }
  0x67   :  { %2494 = vset.pattern.permute.xlu1 %v4233_v63 }
  0x68   :  { %196 = vperm.xlu1 %2494, %v2938_v2  }
  0x6a   :  { %250 = vperm.xlu0 %2488, %v2942_v45  }
  0x6c   :  { %2495 = vset.pattern.permute.xlu1 %v4225_v21 }
  0x6d   :  { %474 = vperm.xlu1 %2495, %v2947_v46  }
  0x6e   :  { %2527 = vset.pattern.permute.xlu0 %v4225_v21 }
  0x6f   :  { %468 = vperm.xlu0 %2527, %v2922_v40  }
  0x71   :  { %2496 = vset.pattern.permute.xlu1 %v4233_v63 }
  0x72   :  { %199 = vperm.xlu1 %2496, %v2947_v46  }
  0x73   :  { %471 = vperm.xlu0 %2527, %v2938_v2  }
  0x76   :  { %2497 = vset.pattern.permute.xlu1 %v4225_v21 }
  0x77   :  { %483 = vperm.xlu0 %2527, %v2958_v47   ;;  %477 = vperm.xlu1 %2497, %v2893_v12  }
  0x7b   :  { %486 = vperm.xlu0 %2527, %v2964_v50   ;;  %2498 = vset.pattern.permute.xlu1 %v4235_v11 }
  0x7c   :  { %380 = vperm.xlu1 %2498, %v2764_v14  }
  0x7f   :  { %498 = vperm.xlu0 %2527, %v2969_v51  }
  0x80   :  { %2499 = vset.pattern.permute.xlu1 %v4225_v21 }
  0x81   :  { %480 = vperm.xlu1 %2499, %v2899_v20  }
  0x83   :  { %501 = vperm.xlu0 %2527, %v2974_v52  }
  0x85   :  { %2500 = vset.pattern.permute.xlu1 %v4235_v11 }
  0x86   :  { %383 = vperm.xlu1 %2500, %v2759_v13  }
  0x87   :  { %513 = vperm.xlu0 %2527, %v2980_v55  }
  0x8a   :  { %2501 = vset.pattern.permute.xlu1 %v4233_v63 }
  0x8b   :  { %516 = vperm.xlu0 %2527, %v2986_v56   ;;  %208 = vperm.xlu1 %2501, %v2958_v47  }
  0x8f   :  { %528 = vperm.xlu0 %2527, %v2992_v57   ;;  %2502 = vset.pattern.permute.xlu1 %v4235_v11 }
  0x90   :  { %386 = vperm.xlu1 %2502, %v2777_v19  }
  0x93   :  { %531 = vperm.xlu0 %2527, %v2997_v60  }
  0x94   :  { %v3001_v61 = vpop.permute.xlu1 %68  ;;  %2503 = vset.pattern.permute.xlu1 %v4233_v63  ;;  %v3004_v62 = vpop.permute.xlu0 %62 }
  0x95   :  { %211 = vperm.xlu1 %2503, %v2964_v50  }
  0x97   :  { %2531 = vset.pattern.permute.xlu0 %v4235_v11 }
  0x98   :  { %v3011_v9 = vpop.permute.xlu1 %71  ;;  %365 = vperm.xlu0 %2531, %v2740_v5   ;;  %v3014_v19 = vpop.permute.xlu0 %65 }
  0x99   :  { %2504 = vset.pattern.permute.xlu1 %v4225_v21 }
  0x9a   :  { %489 = vperm.xlu1 %2504, %v3008_v8  }
  0x9c   :  { %v3018_v10 = vpop.permute.xlu1 %77  ;;  %374 = vperm.xlu0 %2531, %v2752_v7   ;;  %v3021_v15 = vpop.permute.xlu0 %74 }
  0x9e   :  { %2505 = vset.pattern.permute.xlu1 %v4233_v63 }
  0x9f   :  { %214 = vperm.xlu1 %2505, %v3008_v8  }
  0xa0   :  { %v3025_v16 = vpop.permute.xlu1 %83  ;;  %377 = vperm.xlu0 %2531, %v2747_v6   ;;  %v3028_v17 = vpop.permute.xlu0 %80 }
  0xa3   :  { %2506 = vset.pattern.permute.xlu1 %v4225_v21 }
  0xa4   :  { %v3031_v22 = vpop.permute.xlu1 %89  ;;  %389 = vperm.xlu0 %2531, %v2772_v18   ;;  %492 = vperm.xlu1 %2506, %v2906_v27   ;;  %v3035_v25 = vpop.permute.xlu0 %86 }
  0xa8   :  { %v3037_v26 = vpop.permute.xlu1 %95  ;;  %392 = vperm.xlu0 %2531, %v2790_v24   ;;  %2507 = vset.pattern.permute.xlu1 %v4235_v11  ;;  %v3041_v30 = vpop.permute.xlu0 %92 }
  0xa9   :  { %395 = vperm.xlu1 %2507, %v2785_v23  }
  0xac   :  { %v3044_v6 = vpop.permute.xlu1 %101  ;;  %v3046_v31 = vpop.permute.xlu0 %98  ;;  %404 = vperm.xlu0 %2531, %v2816_v34  }
  0xad   :  { %4276 = vst [vmem:[#allocation18_spill] sm:$0xff] %v3044_v6  ;;  %4277 = vst [vmem:[#allocation19_spill] sm:$0xff] %v3046_v31  ;;  %2508 = vset.pattern.permute.xlu1 %v4225_v21 }
  0xae   :  { %495 = vperm.xlu1 %2508, %v2912_v35  }
  0xb0   :  { %v3051_v32 = vpop.permute.xlu1 %107  ;;  %v3053_v36 = vpop.permute.xlu0 %104  ;;  %407 = vperm.xlu0 %2531, %v2811_v33  }
  0xb1   :  { %4278 = vst [vmem:[#allocation20_spill] sm:$0xff] %v3051_v32  ;;  %4279 = vst [vmem:[#allocation21_spill] sm:$0xff] %v3053_v36 }
  0xb2   :  { %2509 = vset.pattern.permute.xlu1 %v4235_v11 }
  0xb3   :  { %398 = vperm.xlu1 %2509, %v2803_v29  }
  0xb4   :  { %v3058_v23 = vpop.permute.xlu1 %113  ;;  %v3060_v1 = vpop.permute.xlu0 %110  ;;  %419 = vperm.xlu0 %2531, %v2837_v43  }
  0xb5   :  { %4280 = vst [vmem:[#allocation22_spill] sm:$0xff] %v3058_v23  ;;  %4281 = vst [vmem:[#allocation23_spill] sm:$0xff] %v3060_v1 }
  0xb7   :  { %2510 = vset.pattern.permute.xlu1 %v4233_v63 }
  0xb8   :  { %v3064_v21 = vpop.permute.xlu1 %119  ;;  %223 = vperm.xlu1 %2510, %v2969_v51   ;;  %v3067_v27 = vpop.permute.xlu0 %116  ;;  %422 = vperm.xlu0 %2531, %v2855_v49   ;;  %v3086_v49 = vadd.s32 64, %v2816_v34 }
  0xb9   :  { %4282 = vst [vmem:[#allocation24_spill] sm:$0xff] %v3064_v21  ;;  %4283 = vst [vmem:[#allocation25_spill] sm:$0xff] %v3067_v27  ;;  %v4237_v21 = vmov 6   ;;  %v4288_v27 = vmov 1  }
  0xba   :  { %4289 = vst [vmem:[#allocation30_spill] sm:$0xff] %v3086_v49 }
  0xbc   :  { %v3070_v47 = vpop.permute.xlu1 %125  ;;  %2511 = vset.pattern.permute.xlu1 %v4235_v11  ;;  %v3073_v46 = vpop.permute.xlu0 %122  ;;  %434 = vperm.xlu0 %2531, %v2876_v58  }
  0xbd   :  { %4284 = vst [vmem:[#allocation26_spill] sm:$0xff] %v3070_v47  ;;  %4285 = vst [vmem:[#allocation27_spill] sm:$0xff] %v3073_v46  ;;  %401 = vperm.xlu1 %2511, %v2798_v28   ;;  %v4241_v46 = vmov 5  }
  0xc0   :  { %v3077_v23 = vpop.permute.xlu1 %131  ;;  %v3079_v63 = vpop.permute.xlu0 %128  ;;  %2535 = vset.pattern.permute.xlu0 %v4237_v21  ;;  %v59_v21 = vlaneseq }
  0xc1   :  { %4286 = vst [vmem:[#allocation28_spill] sm:$0xff] %v3077_v23  ;;  %4287 = vst [vmem:[#allocation29_spill] sm:$0xff] %v3079_v63  ;;  %2512 = vset.pattern.permute.xlu1 %v4288_v27  ;;  %912 = vperm.xlu0 %2535, %v2728_v3   ;;  %v4291_v23 = vmov 3  }
  0xc2   :  { %226 = vperm.xlu1 %2512, %v2974_v52   ;;  %v3099_v34 = vand.u32 127, %v59_v21  ;;  %v4246_v21 = vmov 1.0  }
  0xc4   :  { %v3088_v11 = vpop.permute.xlu0 %134  ;;  %vm136_vm0 = vcmp.eq.s32.totalorder %v3099_v34, %v3004_v62  ;;  %vm137_vm6 = vcmp.eq.s32.totalorder %v3099_v34, %v3014_v19  ;;  %v1239_v19 = vld [vmem:[#allocation2 + $0x1a8] sm:$0xff] }
  0xc5   :  { %4290 = vst [vmem:[#allocation31_spill] sm:$0xff] %v3088_v11  ;;  %v188_v47 = vpop.permute.xlu1 %187  ;;  %2538 = vset.pattern.permute.xlu0 %v4241_v46 }
  0xc6   :  { %2513 = vset.pattern.permute.xlu1 %v4291_v23  ;;  %737 = vperm.xlu0 %2538, %v2879_v59   ;;  %vm261_vm1 = vcmp.eq.s32.totalorder %v3099_v34, %v188_v47 }
  0xc7   :  { %504 = vperm.xlu1 %2513, %v3086_v49   ;;  %vm286_vm5 = vmor %vm136_vm0, %vm261_vm1  ;;  %vm138_vm1 = vcmp.eq.s32.totalorder %v3099_v34, %v3001_v61 }
  0xc9   :  { %v3094_v63 = vpop.permute.xlu0 %190 }
  0xca   :  { %v363_v3 = vpop.permute.xlu1 %362  ;;  %746 = vperm.xlu0 %2538, %v2938_v2   ;;  %vm262_vm7 = vcmp.eq.s32.totalorder %v3099_v34, %v3094_v63 }
  0xcb   :  { %2514 = vset.pattern.permute.xlu1 %v4288_v27  ;;  %vm436_vm2 = vcmp.eq.s32.totalorder %v3099_v34, %v363_v3  ;;  %vm3247_vm8 = vmor %vm137_vm6, %vm262_vm7  ;;  %vm139_vm7 = vcmp.eq.s32.totalorder %v3099_v34, %v3011_v9 }
  0xcc   :  { %229 = vperm.xlu1 %2514, %v3086_v49  }
  0xcd   :  { %v3101_v52 = vpop.permute.xlu0 %202 }
  0xce   :  { %755 = vperm.xlu0 %2538, %v2899_v20   ;;  %v4244_v20 = vmov 4  }
  0xcf   :  { %v463_v46 = vpop.permute.xlu1 %462 }
  0xd0   :  { %2515 = vset.pattern.permute.xlu1 %v4291_v23  ;;  %vm536_vm3 = vcmp.eq.s32.totalorder %v3099_v34, %v463_v46  ;;  %v4292_v46 = vmov 2  }
  0xd1   :  { %v3110_v11 = vpop.permute.xlu0 %205  ;;  %507 = vperm.xlu1 %2515, %v2919_v37   ;;  %vm561_vm4 = vmor %vm436_vm2, %vm536_vm3 }
  0xd2   :  { %2006 = vmatprep.mubr.msk.f32.mxu0 %vm561_vm4, %v4246_v21  ;;  %2555 = vset.pattern.permute.xlu0 %v4244_v20 }
  0xd3   :  { %2007 = vmatmul.mubr.msk.f32.vlgmr.msra.gmra.mrb[0].mxu0 %vm286_vm5, %v4246_v21  ;;  %v3116_v47 = vpop.permute.xlu1 %465  ;;  %640 = vperm.xlu0 %2555, %v2740_v5  }
  0xd4   :  { %vm537_vm9 = vcmp.eq.s32.totalorder %v3099_v34, %v3116_v47 }
  0xd5   :  { %v3119_v62 = vpop.permute.xlu0 %217  ;;  %2516 = vset.pattern.permute.xlu1 %v4292_v46 }
  0xd6   :  { %410 = vperm.xlu1 %2516, %v2829_v39  }
  0xd7   :  { %649 = vperm.xlu0 %2555, %v2752_v7  }
  0xd8   :  { %v3124_v3 = vpop.permute.xlu1 %368 }
  0xd9   :  { %v3126_v1 = vpop.permute.xlu0 %220  ;;  %vm438_vm13 = vcmp.eq.s32.totalorder %v3099_v34, %v3124_v3  ;;  %v3276_v3 = vadd.s32 64, %v2876_v58  ;;  %v1242_v58 = vld [vmem:[#allocation2 + $0x1c0] sm:$0xff] }
  0xda   :  { %2517 = vset.pattern.permute.xlu1 %v4291_v23 }
  0xdb   :  { %510 = vperm.xlu1 %2517, %v2929_v41   ;;  %658 = vperm.xlu0 %2555, %v2759_v13   ;;  %v4250_v41 = vmov 7  }
  0xdd   :  { %v3131_v20 = vpop.permute.xlu0 %232  ;;  %v3133_v5 = vpop.permute.xlu1 %193 }
  0xde   :  { %4293 = vst [vmem:[#allocation32_spill] sm:$0xff] %v3131_v20  ;;  %v1221_v20 = vld [vmem:[#allocation2 + $0x118] sm:$0xff]  ;;  %vm263_vm14 = vcmp.eq.s32.totalorder %v3099_v34, %v3133_v5  ;;  %v1240_v5 = vld [vmem:[#allocation2 + $0x1b0] sm:$0xff] }
  0xdf   :  { %2518 = vset.pattern.permute.xlu1 %v4292_v46  ;;  %667 = vperm.xlu0 %2555, %v2790_v24   ;;  %vm288_vm2 = vmor %vm138_vm1, %vm263_vm14 }
  0xe0   :  { %413 = vperm.xlu1 %2518, %v2824_v38  }
  0xe1   :  { %v3138_v7 = vpop.permute.xlu0 %235 }
  0xe2   :  { %4294 = vst [vmem:[#allocation33_spill] sm:$0xff] %v3138_v7  ;;  %v3140_v39 = vpop.permute.xlu1 %371  ;;  %v1219_v7 = vld [vmem:[#allocation2 + $0x108] sm:$0xff] }
  0xe3   :  { %676 = vperm.xlu0 %2555, %v2798_v28   ;;  %vm439_vm3 = vcmp.eq.s32.totalorder %v3099_v34, %v3140_v39  ;;  %v4306_v39 = vmov 5  }
  0xe4   :  { %2519 = vset.pattern.permute.xlu1 %v4288_v27 }
  0xe5   :  { %v3144_v21 = vpop.permute.xlu0 %247  ;;  %238 = vperm.xlu1 %2519, %v2980_v55  }
  0xe6   :  { %4295 = vst [vmem:[#allocation34_spill] sm:$0xff] %v3144_v21  ;;  %v1218_v21 = vld [vmem:[#allocation2 + $0x100] sm:$0xff] }
  0xe7   :  { %v3147_v13 = vpop.permute.xlu1 %196  ;;  %2574 = vset.pattern.permute.xlu0 %v4250_v41  ;;  %v3163_v41 = vadd.s32 64, %v2837_v43  ;;  %v2304_v32 = vpack.c.bf16 %v1219_v7, %v1218_v21  ;;  %v1222_v21 = vld [vmem:[#allocation2 + $0x120] sm:$0xff]  ;;  %v1223_v7 = vld [vmem:[#allocation2 + $0x128] sm:$0xff] }
  0xe8   :  { %1018 = vperm.xlu0 %2574, %v2922_v40   ;;  %v4298_v40 = vmov 0.0|0.0   ;;  %vm264_vm4 = vcmp.eq.s32.totalorder %v3099_v34, %v3147_v13 }
  0xe9   :  { %v3151_v24 = vpop.permute.xlu0 %250  ;;  %2520 = vset.pattern.permute.xlu1 %v4292_v46  ;;  %4297 = vst [vmem:[#allocation36_spill] sm:$0xff] %v3163_v41  ;;  %2305 = vmatpush1.bf16.msra.mxu0 %v2304_v32 }
  0xea   :  { %4296 = vst [vmem:[#allocation35_spill] sm:$0xff] %v3151_v24  ;;  %416 = vperm.xlu1 %2520, %v2842_v44   ;;  %2391 = vmatpush1.bf16.msra.mxu1 %v2304_v32  ;;  %v2310_v32 = vpack.c.bf16 %v1223_v7, %v1222_v21  ;;  %v4299_v21 = vmov 6   ;;  %v1226_v7 = vld [vmem:[#allocation2 + $0x140] sm:$0xff] }
  0xeb   :  { %2306 = vmatprep.subr.bf16.mxu0 %v4298_v40  ;;  %2376 = vmatprep.subr.bf16.mxu1 %v4298_v40 }
  0xec   :  { %v3155_v28 = vpop.permute.xlu1 %474  ;;  %1027 = vperm.xlu0 %2574, %v2893_v12   ;;  %v1220_v12 = vld [vmem:[#allocation2 + $0x110] sm:$0xff] }
  0xed   :  { %v2307_v36 = vpack.c.bf16 %v1221_v20, %v1220_v12  ;;  %v1224_v12 = vld [vmem:[#allocation2 + $0x130] sm:$0xff]  ;;  %v1225_v20 = vld [vmem:[#allocation2 + $0x138] sm:$0xff] }
  0xee   :  { %v3158_v38 = vpop.permute.xlu0 %468  ;;  %2521 = vset.pattern.permute.xlu1 %v4288_v27 }
  0xef   :  { %241 = vperm.xlu1 %2521, %v2986_v56   ;;  %2308 = vmatpush1.bf16.msra.mxu0 %v2307_v36  ;;  %vm538_vm10 = vcmp.eq.s32.totalorder %v3099_v34, %v3158_v38  ;;  %v1241_v38 = vld [vmem:[#allocation2 + $0x1b8] sm:$0xff] }
  0xf0   :  { %1036 = vperm.xlu0 %2574, %v2964_v50   ;;  %2309 = vmatprep.subr.bf16.mxu0 %v4298_v40  ;;  %vm563_vm15 = vmor %vm438_vm13, %vm538_vm10  ;;  %vm140_vm10 = vcmp.eq.s32.totalorder %v3099_v34, %v3021_v15  ;;  %v1244_v15 = vld [vmem:[#allocation2 + $0x1d0] sm:$0xff] }
  0xf1   :  { %v3166_v24 = vpop.permute.xlu1 %199  ;;  %2392 = vmatpush1.bf16.msra.mxu1 %v2307_v36 }
  0xf2   :  { %v3168_v2 = vpop.permute.xlu0 %471  ;;  %2377 = vmatprep.subr.bf16.mxu1 %v4298_v40 }
  0xf3   :  { %2522 = vset.pattern.permute.xlu1 %v4291_v23  ;;  %2311 = vmatpush1.bf16.msra.mxu0 %v2310_v32  ;;  %vm539_vm0 = vcmp.eq.s32.totalorder %v3099_v34, %v3168_v2  ;;  %v1243_v2 = vld [vmem:[#allocation2 + $0x1c8] sm:$0xff] }
  0xf4   :  { %519 = vperm.xlu1 %2522, %v3163_v41   ;;  %1045 = vperm.xlu0 %2574, %v2912_v35   ;;  %vm564_vm5 = vmor %vm439_vm3, %vm539_vm0  ;;  %v2340_v61 = vpack.c.bf16 %v1243_v2, %v1242_v58  ;;  %vm266_vm0 = vcmp.eq.s32.totalorder %v3099_v34, %v3101_v52  ;;  %vm141_vm3 = vcmp.eq.s32.totalorder %v3099_v34, %v3018_v10  ;;  %v2620_v2 = vld [vmem:[%s4217_s0 + $0x20] sm:$0xff] }
  0xf5   :  { %2312 = vmatprep.subr.bf16.mxu0 %v4298_v40  ;;  %2393 = vmatpush1.bf16.msra.mxu1 %v2310_v32 }
  0xf6   :  { %v3173_v43 = vpop.permute.xlu1 %477  ;;  %v3175_v50 = vpop.permute.xlu0 %483  ;;  %2378 = vmatprep.subr.bf16.mxu1 %v4298_v40 }
  0xf8   :  { %2523 = vset.pattern.permute.xlu1 %v4288_v27  ;;  %1054 = vperm.xlu0 %2574, %v3086_v49   ;;  %v2313_v49 = vpack.c.bf16 %v1225_v20, %v1224_v12  ;;  %v1229_v12 = vld [vmem:[#allocation2 + $0x158] sm:$0xff] }
  0xf9   :  { %244 = vperm.xlu1 %2523, %v3163_v41  }
  0xfa   :  { %v3182_v35 = vpop.permute.xlu0 %486  ;;  %2314 = vmatpush1.bf16.msra.mxu0 %v2313_v49  ;;  %2394 = vmatpush1.bf16.msra.mxu1 %v2313_v49  ;;  %v1231_v49 = vld [vmem:[#allocation2 + $0x168] sm:$0xff] }
  0xfb   :  { %v3185_v6 = vpop.permute.xlu1 %380  ;;  %2315 = vmatprep.subr.bf16.mxu0 %v4298_v40  ;;  %2379 = vmatprep.subr.bf16.mxu1 %v4298_v40 }
  0xfc   :  { %1063 = vperm.xlu0 %2574, %v2980_v55   ;;  %v1227_v55 = vld [vmem:[#allocation2 + $0x148] sm:$0xff] }
  0xfd   :  { %2524 = vset.pattern.permute.xlu1 %v4291_v23  ;;  %v2316_v31 = vpack.c.bf16 %v1227_v55, %v1226_v7  ;;  %v1230_v55 = vld [vmem:[#allocation2 + $0x160] sm:$0xff] }
  0xfe   :  { %522 = vperm.xlu1 %2524, %v2934_v42   ;;  %v3191_v41 = vpop.permute.xlu0 %498 }
  0xff   :  { %2317 = vmatpush1.bf16.msra.mxu0 %v2316_v31  ;;  %2395 = vmatpush1.bf16.msra.mxu1 %v2316_v31  ;;  %v1232_v31 = vld [vmem:[#allocation2 + $0x170] sm:$0xff] }
 0x100   :  { %v3194_v36 = vpop.permute.xlu1 %480  ;;  %2585 = vset.pattern.permute.xlu0 %v4299_v21  ;;  %2318 = vmatprep.subr.bf16.mxu0 %v4298_v40 }
 0x101   :  { %921 = vperm.xlu0 %2585, %v2735_v4   ;;  %v1228_v4 = vld [vmem:[#allocation2 + $0x150] sm:$0xff]  ;;  %2380 = vmatprep.subr.bf16.mxu1 %v4298_v40 }
 0x102   :  { %2525 = vset.pattern.permute.xlu1 %v4292_v46  ;;  %v3200_v42 = vpop.permute.xlu0 %501 }
 0x103   :  { %4300 = vst [vmem:[#allocation37_spill] sm:$0xff] %v3200_v42  ;;  %425 = vperm.xlu1 %2525, %v2850_v48   ;;  %v2319_v42 = vpack.c.bf16 %v1229_v12, %v1228_v4  ;;  %v1233_v4 = vld [vmem:[#allocation2 + $0x178] sm:$0xff] }
 0x105   :  { %v3205_v32 = vpop.permute.xlu1 %383  ;;  %930 = vperm.xlu0 %2585, %v2764_v14   ;;  %2320 = vmatpush1.bf16.msra.mxu0 %v2319_v42 }
 0x106   :  { %v3208_v20 = vpop.permute.xlu0 %513  ;;  %2321 = vmatprep.subr.bf16.mxu0 %v4298_v40  ;;  %2396 = vmatpush1.bf16.msra.mxu1 %v2319_v42  ;;  %v1234_v42 = vld [vmem:[#allocation2 + $0x180] sm:$0xff] }
 0x107   :  { %4301 = vst [vmem:[#allocation38_spill] sm:$0xff] %v3208_v20  ;;  %2526 = vset.pattern.permute.xlu1 %v4291_v23  ;;  %v2322_v20 = vpack.c.bf16 %v1231_v49, %v1230_v55  ;;  %2381 = vmatprep.subr.bf16.mxu1 %v4298_v40 }
 0x108   :  { %525 = vperm.xlu1 %2526, %v2942_v45  }
 0x109   :  { %939 = vperm.xlu0 %2585, %v2772_v18   ;;  %2323 = vmatpush1.bf16.msra.mxu0 %v2322_v20  ;;  %v2325_v18 = vpack.c.bf16 %v1233_v4, %v1232_v31  ;;  %v1237_v31 = vld [vmem:[#allocation2 + $0x198] sm:$0xff] }
 0x10a   :  { %v3215_v14 = vpop.permute.xlu1 %208  ;;  %v3217_v7 = vpop.permute.xlu0 %516  ;;  %2324 = vmatprep.subr.bf16.mxu0 %v4298_v40  ;;  %2397 = vmatpush1.bf16.msra.mxu1 %v2322_v20  ;;  %v1236_v20 = vld [vmem:[#allocation2 + $0x190] sm:$0xff] }
 0x10b   :  { %4302 = vst [vmem:[#allocation39_spill] sm:$0xff] %v3217_v7  ;;  %2382 = vmatprep.subr.bf16.mxu1 %v4298_v40  ;;  %v2331_v4 = vpack.c.bf16 %v1237_v31, %v1236_v20  ;;  %v4313_v20 = vld [vmem:[#allocation11_spill] sm:$0xff]  ;;  %v4314_v31 = vld [vmem:[#allocation18_spill] sm:$0xff] }
 0x10c   :  { %2528 = vset.pattern.permute.xlu1 %v4292_v46 }
 0x10d   :  { %428 = vperm.xlu1 %2528, %v2868_v54   ;;  %948 = vperm.xlu0 %2585, %v2803_v29   ;;  %v1235_v54 = vld [vmem:[#allocation2 + $0x188] sm:$0xff] }
 0x10e   :  { %v3223_v12 = vpop.permute.xlu0 %528  ;;  %2326 = vmatpush1.bf16.msra.mxu0 %v2325_v18  ;;  %v2328_v49 = vpack.c.bf16 %v1235_v54, %v1234_v42  ;;  %2398 = vmatpush1.bf16.msra.mxu1 %v2325_v18  ;;  %v2337_v54 = vpack.c.bf16 %v1241_v38, %v1240_v5  ;;  %v4319_v5 = vld [vmem:[#allocation12_spill] sm:$0xff] }
 0x10f   :  { %v3227_v7 = vpop.permute.xlu1 %386  ;;  %2327 = vmatprep.subr.bf16.mxu0 %v4298_v40  ;;  %2383 = vmatprep.subr.bf16.mxu1 %v4298_v40 }
 0x111   :  { %2529 = vset.pattern.permute.xlu1 %v4288_v27  ;;  %957 = vperm.xlu0 %2585, %v2811_v33  }
 0x112   :  { %253 = vperm.xlu1 %2529, %v2992_v57   ;;  %v3232_v55 = vpop.permute.xlu0 %531  ;;  %2329 = vmatpush1.bf16.msra.mxu0 %v2328_v49 }
 0x113   :  { %2330 = vmatprep.subr.bf16.mxu0 %v4298_v40  ;;  %2399 = vmatpush1.bf16.msra.mxu1 %v2328_v49 }
 0x114   :  { %v3236_v29 = vpop.permute.xlu1 %211  ;;  %2384 = vmatprep.subr.bf16.mxu1 %v4298_v40 }
 0x115   :  { %966 = vperm.xlu0 %2585, %v2842_v44   ;;  %v4305_v44 = vmov 1.0  }
 0x116   :  { %2530 = vset.pattern.permute.xlu1 %v4292_v46  ;;  %2332 = vmatpush1.bf16.msra.mxu0 %v2331_v4 }
 0x117   :  { %v366_v33 = vpop.permute.xlu0 %365  ;;  %431 = vperm.xlu1 %2530, %v2863_v53   ;;  %v1238_v53 = vld [vmem:[#allocation2 + $0x1a0] sm:$0xff]  ;;  %2333 = vmatprep.subr.bf16.mxu0 %v4298_v40 }
 0x118   :  { %vm437_vm11 = vcmp.eq.s32.totalorder %v3099_v34, %v366_v33  ;;  %v2334_v47 = vpack.c.bf16 %v1239_v19, %v1238_v53  ;;  %2400 = vmatpush1.bf16.msra.mxu1 %v2331_v4  ;;  %v4315_v4 = vld [vmem:[#allocation21_spill] sm:$0xff]  ;;  %v4317_v53 = vld [vmem:[#allocation32_spill] sm:$0xff] }
 0x119   :  { %vm562_vm12 = vmor %vm437_vm11, %vm537_vm9  ;;  %v3256_v63 = vpop.permute.xlu1 %489  ;;  %975 = vperm.xlu0 %2585, %v2850_v48   ;;  %2385 = vmatprep.subr.bf16.mxu1 %v4298_v40  ;;  %vm540_vm9 = vcmp.eq.s32.totalorder %v3099_v34, %v3155_v28  ;;  %vm265_vm11 = vcmp.eq.s32.totalorder %v3099_v34, %v3166_v24  ;;  %v1246_v24 = vld [vmem:[#allocation2 + $0x1e0] sm:$0xff]  ;;  %v1247_v28 = vld [vmem:[#allocation2 + $0x1e8] sm:$0xff] }
 0x11a   :  { %2008 = vmatprep.mubr.msk.f32.mxu0 %vm562_vm12, %v4305_v44  ;;  %2335 = vmatpush1.bf16.msra.mxu0 %v2334_v47  ;;  %vm290_vm14 = vmor %vm140_vm10, %vm265_vm11  ;;  %v2346_v10 = vpack.c.bf16 %v1247_v28, %v1246_v24  ;;  %vm543_vm10 = vcmp.eq.s32.totalorder %v3099_v34, %v3175_v50  ;;  %vm443_vm11 = vcmp.eq.s32.totalorder %v3099_v34, %v3205_v32  ;;  %v2612_v32 = vld [vmem:[%s4217_s0] sm:$0xff]  ;;  %v4325_v24 = vld [vmem:[#allocation39_spill] sm:$0xff] }
 0x11b   :  { %v375_v46 = vpop.permute.xlu0 %374  ;;  %2532 = vset.pattern.permute.xlu1 %v4288_v27  ;;  %2009 = vmatmul.mubr.msk.f32.gmra.mrb[2].mxu0 %vm3247_vm8, %v4305_v44  ;;  %vm289_vm8 = vmor %vm139_vm7, %vm264_vm4  ;;  %vm142_vm4 = vcmp.eq.s32.totalorder %v3099_v34, %v3028_v17  ;;  %vm442_vm7 = vcmp.eq.s32.totalorder %v3099_v34, %v3185_v6  ;;  %v1249_v17 = vld [vmem:[#allocation2 + $0x1f8] sm:$0xff] }
 0x11c   :  { %256 = vperm.xlu1 %2532, %v2997_v60   ;;  %2010 = vmatprep.mubr.msk.f32.mxu0 %vm563_vm15, %v4305_v44  ;;  %vm440_vm6 = vcmp.eq.s32.totalorder %v3099_v34, %v375_v46  ;;  %vm541_vm15 = vcmp.eq.s32.totalorder %v3099_v34, %v3173_v43  ;;  %v4307_v43 = vmov 7   ;;  %v4318_v46 = vld [vmem:[#allocation20_spill] sm:$0xff] }
 0x11d   :  { %2336 = vmatprep.subr.bf16.mxu0 %v4298_v40  ;;  %2596 = vset.pattern.permute.xlu0 %v4306_v39  ;;  %vm565_vm12 = vmor %vm440_vm6, %vm540_vm9 }
 0x11e   :  { %v3281_v42 = vpop.permute.xlu1 %214  ;;  %2338 = vmatpush1.bf16.msra.mxu0 %v2337_v54  ;;  %764 = vperm.xlu0 %2596, %v3008_v8   ;;  %vm291_vm6 = vmor %vm141_vm3, %vm266_vm0  ;;  %vm143_vm0 = vcmp.eq.s32.totalorder %v3099_v34, %v3025_v16  ;;  %v2613_v16 = vld [vmem:[%s4217_s0 + $0x8] sm:$0xff] }
 0x11f   :  { %2011 = vmatmul.mubr.msk.f32.gmra.mrb[4].mxu0 %vm288_vm2, %v4305_v44  ;;  %v378_v48 = vpop.permute.xlu0 %377  ;;  %2339 = vmatprep.subr.bf16.mxu0 %v4298_v40  ;;  %vm542_vm2 = vcmp.eq.s32.totalorder %v3099_v34, %v3194_v36  ;;  %v4310_v36 = vmov 4  }
 0x120   :  { %2533 = vset.pattern.permute.xlu1 %v4291_v23  ;;  %2012 = vmatprep.mubr.msk.f32.mxu0 %vm564_vm5, %v4305_v44  ;;  %vm441_vm13 = vcmp.eq.s32.totalorder %v3099_v34, %v378_v48  ;;  %v1245_v23 = vld [vmem:[#allocation2 + $0x1d8] sm:$0xff]  ;;  %vm267_vm5 = vcmp.eq.s32.totalorder %v3099_v34, %v3110_v11  ;;  %v2621_v11 = vld [vmem:[%s4217_s0 + $0x28] sm:$0xff] }
 0x121   :  { %534 = vperm.xlu1 %2533, %v3276_v3   ;;  %2401 = vmatpush1.bf16.msra.mxu1 %v2334_v47  ;;  %v2343_v13 = vpack.c.bf16 %v1245_v23, %v1244_v15  ;;  %vm566_vm1 = vmor %vm441_vm13, %vm541_vm15  ;;  %vm268_vm13 = vcmp.eq.s32.totalorder %v3099_v34, %v3215_v14  ;;  %vm444_vm15 = vcmp.eq.s32.totalorder %v3099_v34, %v3227_v7  ;;  %v3484_v47 = vld [vmem:[%s4217_s0 + $0xc0] sm:$0xff]  ;;  %v2619_v48 = vld [vmem:[%s4217_s0 + $0x18] sm:$0xff] }
 0x122   :  { %2341 = vmatpush1.bf16.msra.mxu0 %v2340_v61  ;;  %773 = vperm.xlu0 %2596, %v2969_v51   ;;  %vm3346_vm9 = vmor %vm142_vm4, %vm267_vm5  ;;  %vm269_vm4 = vcmp.eq.s32.totalorder %v3099_v34, %v3236_v29  ;;  %v4323_v15 = vld [vmem:[#allocation13_spill] sm:$0xff] }
 0x123   :  { %2013 = vmatmul.mubr.msk.f32.gmra.mrb[6].mxu0 %vm289_vm8, %v4305_v44  ;;  %v3308_v9 = vpop.permute.xlu1 %492  ;;  %2342 = vmatprep.subr.bf16.mxu0 %v4298_v40  ;;  %vm567_vm8 = vmor %vm442_vm7, %vm542_vm2  ;;  %v390_v50 = vpop.permute.xlu0 %389  ;;  %vm144_vm2 = vcmp.eq.s32.totalorder %v3099_v34, %v3035_v25  ;;  %vm545_vm7 = vcmp.eq.s32.totalorder %v3099_v34, %v3256_v63  ;;  %v4316_v63 = vld [vmem:[#allocation9_spill] sm:$0xff] }
 0x124   :  { %2014 = vmatprep.mubr.msk.f32.mxu0 %vm565_vm12, %v4305_v44  ;;  %2386 = vmatprep.subr.bf16.mxu1 %v4298_v40  ;;  %vm568_vm12 = vmor %vm443_vm11, %vm543_vm10  ;;  %vm445_vm5 = vcmp.eq.s32.totalorder %v3099_v34, %v390_v50  ;;  %vm145_vm11 = vcmp.eq.s32.totalorder %v3099_v34, %v3031_v22  ;;  %v3413_v22 = vld [vmem:[%s4217_s0 + $0x80] sm:$0xff] }
 0x125   :  { %2534 = vset.pattern.permute.xlu1 %v4288_v27  ;;  %2402 = vmatpush1.bf16.msra.mxu1 %v2337_v54  ;;  %v4321_v54 = vld [vmem:[#allocation33_spill] sm:$0xff] }
 0x126   :  { %259 = vperm.xlu1 %2534, %v3276_v3   ;;  %2344 = vmatpush1.bf16.msra.mxu0 %v2343_v13 }
 0x127   :  { %2015 = vmatmul.mubr.msk.f32.gmra.mrb[8].mxu0 %vm290_vm14, %v4305_v44  ;;  %2345 = vmatprep.subr.bf16.mxu0 %v4298_v40  ;;  %vm544_vm14 = vcmp.eq.s32.totalorder %v3099_v34, %v3182_v35  ;;  %v393_v35 = vpop.permute.xlu0 %392 }
 0x128   :  { %2016 = vmatprep.mubr.msk.f32.mxu0 %vm566_vm1, %v4305_v44  ;;  %v3325_v27 = vpop.permute.xlu1 %395  ;;  %782 = vperm.xlu0 %2596, %v2919_v37   ;;  %vm293_vm1 = vmor %vm143_vm0, %vm268_vm13  ;;  %vm446_vm10 = vcmp.eq.s32.totalorder %v3099_v34, %v393_v35  ;;  %vm271_vm13 = vcmp.eq.s32.totalorder %v3099_v34, %v3119_v62  ;;  %v3427_v62 = vld [vmem:[%s4217_s0 + $0x98] sm:$0xff] }
 0x129   :  { %2387 = vmatprep.subr.bf16.mxu1 %v4298_v40  ;;  %vm569_vm3 = vmor %vm444_vm15, %vm544_vm14  ;;  %vm546_vm15 = vcmp.eq.s32.totalorder %v3099_v34, %v3308_v9  ;;  %v4328_v35 = vld [vmem:[#allocation24_spill] sm:$0xff] }
 0x12a   :  { %2536 = vset.pattern.permute.xlu1 %v4307_v43  ;;  %2347 = vmatpush1.bf16.msra.mxu0 %v2346_v10  ;;  %vm571_vm0 = vmor %vm446_vm10, %vm546_vm15 }
 0x12b   :  { %1012 = vperm.xlu1 %2536, %v2879_v59   ;;  %2017 = vmatmul.mubr.msk.f32.gmra.mrb[10].mxu0 %vm291_vm6, %v4305_v44  ;;  %v1248_v59 = vld [vmem:[#allocation2 + $0x1f0] sm:$0xff]  ;;  %vm294_vm6 = vmor %vm144_vm2, %vm269_vm4  ;;  %vm272_vm4 = vcmp.eq.s32.totalorder %v3099_v34, %v3126_v1  ;;  %v405_v49 = vpop.permute.xlu0 %404 }
 0x12c   :  { %2018 = vmatprep.mubr.msk.f32.mxu0 %vm567_vm8, %v4305_v44  ;;  %2348 = vmatprep.subr.bf16.mxu0 %v4298_v40  ;;  %v2349_v6 = vpack.c.bf16 %v1249_v17, %v1248_v59  ;;  %vm270_vm8 = vcmp.eq.s32.totalorder %v3099_v34, %v3281_v42  ;;  %v3443_v1 = vld [vmem:[%s4217_s0 + $0xb0] sm:$0xff] }
 0x12d   :  { %v3356_v52 = vpop.permute.xlu1 %495  ;;  %2403 = vmatpush1.bf16.msra.mxu1 %v2340_v61  ;;  %791 = vperm.xlu0 %2596, %v2986_v56   ;;  %vm295_vm14 = vmor %vm145_vm11, %vm270_vm8  ;;  %vm147_vm8 = vcmp.eq.s32.totalorder %v3099_v34, %v3037_v26  ;;  %v2617_v26 = vld [vmem:[%s4217_s0 + $0x10] sm:$0xff]  ;;  %v4322_v61 = vld [vmem:[#allocation38_spill] sm:$0xff] }
 0x12e   :  { %2350 = vmatpush1.bf16.msra.mxu0 %v2349_v6  ;;  %2388 = vmatprep.subr.bf16.mxu1 %v4298_v40  ;;  %vm547_vm2 = vcmp.eq.s32.totalorder %v3099_v34, %v3356_v52  ;;  %v4320_v42 = vld [vmem:[#allocation23_spill] sm:$0xff]  ;;  %v4326_v52 = vld [vmem:[#allocation25_spill] sm:$0xff] }
 0x12f   :  { %2537 = vset.pattern.permute.xlu1 %v4310_v36  ;;  %2019 = vmatmul.mubr.msk.f32.gmra.mrb[12].mxu0 %vm3346_vm9, %v4305_v44  ;;  %vm570_vm9 = vmor %vm445_vm5, %vm545_vm7  ;;  %v408_v18 = vpop.permute.xlu0 %407 }
 0x130   :  { %637 = vperm.xlu1 %2537, %v2612_v32   ;;  %2020 = vmatprep.mubr.msk.f32.mxu0 %vm568_vm12, %v4305_v44  ;;  %vm146_vm12 = vcmp.eq.s32.totalorder %v3099_v34, %v3041_v30  ;;  %v4327_v32 = vld [vmem:[#allocation5_spill] sm:$0xff] }
 0x131   :  { %2404 = vmatpush1.bf16.msra.mxu1 %v2343_v13  ;;  %800 = vperm.xlu0 %2596, %v2942_v45   ;;  %v4324_v13 = vld [vmem:[#allocation22_spill] sm:$0xff] }
 0x132   :  { %v399_v14 = vpop.permute.xlu1 %398  ;;  %2389 = vmatprep.subr.bf16.mxu1 %v4298_v40 }
 0x133   :  { %2021 = vmatmul.mubr.msk.f32.gmra.mrb[14].mxu0 %vm293_vm1, %v4305_v44  ;;  %vm296_vm1 = vmor %vm146_vm12, %vm271_vm13  ;;  %vm448_vm7 = vcmp.eq.s32.totalorder %v3099_v34, %v399_v14 }
 0x134   :  { %2539 = vset.pattern.permute.xlu1 %v4299_v21  ;;  %2022 = vmatprep.mubr.msk.f32.mxu0 %vm569_vm3, %v4305_v44  ;;  %vm447_vm3 = vcmp.eq.s32.totalorder %v3099_v34, %v3325_v27  ;;  %v420_v27 = vpop.permute.xlu0 %419 }
 0x135   :  { %915 = vperm.xlu1 %2539, %v2613_v16   ;;  %2405 = vmatpush1.bf16.msra.mxu1 %v2346_v10  ;;  %vm572_vm5 = vmor %vm447_vm3, %vm547_vm2  ;;  %vm450_vm2 = vcmp.eq.s32.totalorder %v3099_v34, %v405_v49 }
 0x136   :  { %2390 = vmatprep.subr.bf16.mxu1 %v4298_v40  ;;  %2599 = vset.pattern.permute.xlu0 %v4310_v36 }
 0x137   :  { %2023 = vmatmul.mubr.msk.f32.gmra.mrb[16].mxu0 %vm294_vm6, %v4305_v44  ;;  %v224_v25 = vpop.permute.xlu1 %223  ;;  %685 = vperm.xlu0 %2599, %v3413_v22   ;;  %vm548_vm6 = vcmp.eq.s32.totalorder %v3099_v34, %v3191_v41  ;;  %v4312_v41 = vld [vmem:[#allocation37_spill] sm:$0xff] }
 0x138   :  { %2024 = vmatprep.mubr.msk.f32.mxu0 %vm570_vm9, %v4305_v44  ;;  %vm297_vm9 = vmor %vm147_vm8, %vm272_vm4  ;;  %vm273_vm12 = vcmp.eq.s32.totalorder %v3099_v34, %v224_v25  ;;  %vm549_vm13 = vcmp.eq.s32.totalorder %v3099_v34, %v4312_v41  ;;  %vm149_vm4 = vcmp.eq.s32.totalorder %v3099_v34, %v4314_v31  ;;  %v423_v10 = vpop.permute.xlu0 %422  ;;  %v4329_v25 = vld [vmem:[#allocation27_spill] sm:$0xff] }
 0x139   :  { %2540 = vset.pattern.permute.xlu1 %v4307_v43  ;;  %2406 = vmatpush1.bf16.msra.mxu1 %v2349_v6  ;;  %vm573_vm11 = vmor %vm448_vm7, %vm548_vm6  ;;  %v2622_v41 = vld [vmem:[%s4217_s0 + $0x30] sm:$0xff] }
 0x13a   :  { %1015 = vperm.xlu1 %2540, %v2886_v0   ;;  %2351 = vmatprep.subr.bf16.mxu1 %v4298_v40 }
 0x13b   :  { %2025 = vmatmul.mubr.msk.f32.gmra.mrb[18].mxu0 %vm295_vm14, %v4305_v44  ;;  %694 = vperm.xlu0 %2599, %v3427_v62  }
 0x13c   :  { %2026 = vmatprep.mubr.msk.f32.mxu0 %vm571_vm0, %v4305_v44  ;;  %v402_v30 = vpop.permute.xlu1 %401  ;;  %v3535_v17 = vpop.permute.xlu0 %434 }
 0x13d   :  { %vm449_vm14 = vcmp.eq.s32.totalorder %v3099_v34, %v402_v30  ;;  %v4330_v30 = vld [vmem:[#allocation34_spill] sm:$0xff] }
 0x13e   :  { %2541 = vset.pattern.permute.xlu1 %v4306_v39  ;;  %vm574_vm0 = vmor %vm449_vm14, %vm549_vm13  ;;  %vm151_vm13 = vcmp.eq.s32.totalorder %v3099_v34, %v4318_v46  ;;  %v4335_v46 = vld [vmem:[#allocation29_spill] sm:$0xff] }
 0x13f   :  { %740 = vperm.xlu1 %2541, %v2886_v0   ;;  %2027 = vmatmul.mubr.msk.f32.gmra.mrb[20].mxu0 %vm296_vm1, %v4305_v44  ;;  %v4311_v0 = vld [vmem:[#allocation19_spill] sm:$0xff] }
 0x140   :  { %2028 = vmatprep.mubr.msk.f32.mxu0 %vm572_vm5, %v4305_v44  ;;  %703 = vperm.xlu0 %2599, %v3443_v1   ;;  %vm148_vm10 = vcmp.eq.s32.totalorder %v3099_v34, %v4311_v0  ;;  %vm150_vm5 = vcmp.eq.s32.totalorder %v3099_v34, %v4315_v4  ;;  %v3542_v50 = vpop.permute.xlu0 %912  ;;  %v4332_v4 = vld [vmem:[#allocation35_spill] sm:$0xff] }
 0x141   :  { %v227_v7 = vpop.permute.xlu1 %226  ;;  %vm298_vm15 = vmor %vm148_vm10, %vm273_vm12  ;;  %vm451_vm10 = vcmp.eq.s32.totalorder %v3099_v34, %v408_v18  ;;  %v4333_v18 = vld [vmem:[#allocation26_spill] sm:$0xff] }
 0x142   :  { %vm274_vm1 = vcmp.eq.s32.totalorder %v3099_v34, %v227_v7  ;;  %v4331_v7 = vld [vmem:[#allocation6_spill] sm:$0xff] }
 0x143   :  { %2542 = vset.pattern.permute.xlu1 %v4299_v21  ;;  %2029 = vmatmul.mubr.msk.f32.gmra.mrb[22].mxu0 %vm297_vm9, %v4305_v44  ;;  %vm299_vm6 = vmor %vm149_vm4, %vm274_vm1  ;;  %vm277_vm1 = vcmp.eq.s32.totalorder %v3099_v34, %v4321_v54 }
 0x144   :  { %918 = vperm.xlu1 %2542, %v2617_v26   ;;  %2030 = vmatprep.mubr.msk.f32.mxu0 %vm573_vm11, %v4305_v44  ;;  %vm276_vm11 = vcmp.eq.s32.totalorder %v3099_v34, %v4317_v53 }
 0x145   :  { %2602 = vset.pattern.permute.xlu0 %v4307_v43  ;;  %v3551_v16 = vpop.permute.xlu0 %737 }
 0x146   :  { %v505_v29 = vpop.permute.xlu1 %504  ;;  %1072 = vperm.xlu0 %2602, %v4313_v20  }
 0x147   :  { %2031 = vmatmul.mubr.msk.f32.gmra.mrb[24].mxu0 %vm298_vm15, %v4305_v44  ;;  %vm550_vm3 = vcmp.eq.s32.totalorder %v3099_v34, %v505_v29  ;;  %vm301_vm15 = vmor %vm151_vm13, %vm276_vm11  ;;  %v2623_v29 = vld [vmem:[%s4217_s0 + $0x38] sm:$0xff] }
 0x148   :  { %2543 = vset.pattern.permute.xlu1 %v4310_v36  ;;  %2032 = vmatprep.mubr.msk.f32.mxu0 %vm574_vm0, %v4305_v44  ;;  %vm575_vm7 = vmor %vm450_vm2, %vm550_vm3  ;;  %vm152_vm0 = vcmp.eq.s32.totalorder %v3099_v34, %v4320_v42 }
 0x149   :  { %643 = vperm.xlu1 %2543, %v2617_v26   ;;  %vm302_vm2 = vmor %vm152_vm0, %vm277_vm1  ;;  %v3566_v26 = vpop.permute.xlu0 %746 }
 0x14a   :  { %1081 = vperm.xlu0 %2602, %v2997_v60  }
 0x14b   :  { %2033 = vmatmul.mubr.msk.f32.gmra.mrb[26].mxu0 %vm299_vm6, %v4305_v44  ;;  %v230_v33 = vpop.permute.xlu1 %229  ;;  %vm553_vm6 = vcmp.eq.s32.totalorder %v3099_v34, %v4322_v61 }
 0x14c   :  { %vm275_vm8 = vcmp.eq.s32.totalorder %v3099_v34, %v230_v33  ;;  %2034 = vmatprep.mubr.msk.f32.mxu0 %vm575_vm7, %v4305_v44 }
 0x14d   :  { %vm300_vm9 = vmor %vm150_vm5, %vm275_vm8  ;;  %2544 = vset.pattern.permute.xlu1 %v4306_v39  ;;  %v3573_v31 = vpop.permute.xlu0 %755 }
 0x14e   :  { %743 = vperm.xlu1 %2544, %v4316_v63   ;;  %2607 = vset.pattern.permute.xlu0 %v4299_v21  ;;  %v4334_v63 = vld [vmem:[#allocation14_spill] sm:$0xff] }
 0x14f   :  { %2035 = vmatmul.mubr.msk.f32.gmra.mrb[28].mxu0 %vm300_vm9, %v4305_v44  ;;  %984 = vperm.xlu0 %2607, %v3484_v47   ;;  %vm153_vm9 = vcmp.eq.s32.totalorder %v3099_v34, %v4324_v13  ;;  %v2625_v13 = vld [vmem:[%s4217_s0 + $0x48] sm:$0xff] }
 0x150   :  { %v508_v19 = vpop.permute.xlu1 %507 }
 0x151   :  { %vm551_vm12 = vcmp.eq.s32.totalorder %v3099_v34, %v508_v19 }
 0x152   :  { %vm576_vm14 = vmor %vm451_vm10, %vm551_vm12  ;;  %2545 = vset.pattern.permute.xlu1 %v4307_v43  ;;  %vm554_vm12 = vcmp.eq.s32.totalorder %v3099_v34, %v4325_v24  ;;  %v3587_v19 = vpop.permute.xlu0 %640  ;;  %v2626_v24 = vld [vmem:[%s4217_s0 + $0x50] sm:$0xff] }
 0x153   :  { %1021 = vperm.xlu1 %2545, %v4319_v5   ;;  %2036 = vmatprep.mubr.msk.f32.mxu0 %vm576_vm14, %v4305_v44 }
 0x154   :  { %2037 = vmatmul.mubr.msk.f32.gmra.mrb[30].mxu0 %vm301_vm15, %v4305_v44  ;;  %2610 = vset.pattern.permute.xlu0 %v4306_v39  ;;  %vm154_vm15 = vcmp.eq.s32.totalorder %v3099_v34, %v4326_v52 }
 0x155   :  { %v411_v38 = vpop.permute.xlu1 %410  ;;  %809 = vperm.xlu0 %2610, %v3276_v3  }
 0x156   :  { %vm452_vm3 = vcmp.eq.s32.totalorder %v3099_v34, %v411_v38  ;;  %v2624_v38 = vld [vmem:[%s4217_s0 + $0x40] sm:$0xff] }
 0x157   :  { %2546 = vset.pattern.permute.xlu1 %v4310_v36 }
 0x158   :  { %646 = vperm.xlu1 %2546, %v2619_v48  }
 0x159   :  { %2611 = vset.pattern.permute.xlu0 %v4307_v43 }
 0x15a   :  { %v511_v58 = vpop.permute.xlu1 %510 }
 0x15b   :  { %vm552_vm4 = vcmp.eq.s32.totalorder %v3099_v34, %v511_v58  ;;  %v4336_v58 = vld [vmem:[#allocation28_spill] sm:$0xff] }
 0x15c   :  { %vm577_vm5 = vmor %vm452_vm3, %vm552_vm4  ;;  %2547 = vset.pattern.permute.xlu1 %v4299_v21 }
 0x15d   :  { %924 = vperm.xlu1 %2547, %v2620_v2   ;;  %2038 = vmatprep.mubr.msk.f32.mxu0 %vm577_vm5, %v4305_v44  ;;  %vm155_vm5 = vcmp.eq.s32.totalorder %v3099_v34, %v4328_v35 }
 0x15e   :  { %2039 = vmatmul.mubr.msk.f32.gmra.mrb[32].mxu0 %vm302_vm2, %v4305_v44  ;;  %vm455_vm2 = vcmp.eq.s32.totalorder %v3099_v34, %v420_v27 }
 0x15f   :  { %v414_v9 = vpop.permute.xlu1 %413 }
 0x160   :  { %vm453_vm7 = vcmp.eq.s32.totalorder %v3099_v34, %v414_v9  ;;  %v4338_v9 = vld [vmem:[#allocation31_spill] sm:$0xff] }
 0x161   :  { %vm578_vm8 = vmor %vm453_vm7, %vm553_vm6  ;;  %2548 = vset.pattern.permute.xlu1 %v4307_v43 }
 0x162   :  { %1024 = vperm.xlu1 %2548, %v4323_v15   ;;  %2040 = vmatprep.mubr.msk.f32.mxu0 %vm578_vm8, %v4305_v44  ;;  %vm156_vm8 = vcmp.eq.s32.totalorder %v3099_v34, %v4329_v25 }
 0x164   :  { %v239_v23 = vpop.permute.xlu1 %238 }
 0x165   :  { %vm278_vm10 = vcmp.eq.s32.totalorder %v3099_v34, %v239_v23 }
 0x166   :  { %vm303_vm11 = vmor %vm153_vm9, %vm278_vm10  ;;  %2549 = vset.pattern.permute.xlu1 %v4306_v39  ;;  %vm281_vm9 = vcmp.eq.s32.totalorder %v3099_v34, %v4330_v30  ;;  %vm456_vm10 = vcmp.eq.s32.totalorder %v3099_v34, %v423_v10 }
 0x167   :  { %749 = vperm.xlu1 %2549, %v4323_v15   ;;  %2041 = vmatmul.mubr.msk.f32.gmra.mrb[34].mxu0 %vm303_vm11, %v4305_v44  ;;  %vm306_vm11 = vmor %vm156_vm8, %vm281_vm9 }
 0x169   :  { %v417_v28 = vpop.permute.xlu1 %416 }
 0x16a   :  { %vm454_vm13 = vcmp.eq.s32.totalorder %v3099_v34, %v417_v28 }
 0x16b   :  { %vm579_vm14 = vmor %vm454_vm13, %vm554_vm12  ;;  %2550 = vset.pattern.permute.xlu1 %v4299_v21 }
 0x16c   :  { %927 = vperm.xlu1 %2550, %v2621_v11   ;;  %2042 = vmatprep.mubr.msk.f32.mxu0 %vm579_vm14, %v4305_v44  ;;  %vm282_vm14 = vcmp.eq.s32.totalorder %v3099_v34, %v4332_v4  ;;  %v4341_v4 = vld [vmem:[#allocation16_spill] sm:$0xff] }
 0x16e   :  { %v242_v59 = vpop.permute.xlu1 %241 }
 0x16f   :  { %vm279_vm0 = vcmp.eq.s32.totalorder %v3099_v34, %v242_v59 }
 0x170   :  { %vm304_vm1 = vmor %vm154_vm15, %vm279_vm0  ;;  %2551 = vset.pattern.permute.xlu1 %v4310_v36 }
 0x171   :  { %652 = vperm.xlu1 %2551, %v2621_v11   ;;  %2043 = vmatmul.mubr.msk.f32.gmra.mrb[36].mxu0 %vm304_vm1, %v4305_v44  ;;  %vm157_vm1 = vcmp.eq.s32.totalorder %v3099_v34, %v4333_v18  ;;  %v4339_v11 = vld [vmem:[#allocation7_spill] sm:$0xff] }
 0x173   :  { %v520_v6 = vpop.permute.xlu1 %519 }
 0x174   :  { %vm555_vm3 = vcmp.eq.s32.totalorder %v3099_v34, %v520_v6  ;;  %v2627_v6 = vld [vmem:[%s4217_s0 + $0x58] sm:$0xff] }
 0x175   :  { %vm580_vm4 = vmor %vm455_vm2, %vm555_vm3  ;;  %2552 = vset.pattern.permute.xlu1 %v4306_v39 }
 0x176   :  { %752 = vperm.xlu1 %2552, %v4327_v32   ;;  %2044 = vmatprep.mubr.msk.f32.mxu0 %vm580_vm4, %v4305_v44  ;;  %vm307_vm3 = vmor %vm157_vm1, %vm282_vm14  ;;  %vm558_vm4 = vcmp.eq.s32.totalorder %v3099_v34, %v3223_v12  ;;  %v3596_v12 = vpop.permute.xlu0 %649 }
 0x178   :  { %v245_v14 = vpop.permute.xlu1 %244 }
 0x179   :  { %vm280_vm6 = vcmp.eq.s32.totalorder %v3099_v34, %v245_v14 }
 0x17a   :  { %vm305_vm7 = vmor %vm155_vm5, %vm280_vm6  ;;  %2553 = vset.pattern.permute.xlu1 %v4307_v43  ;;  %v3607_v54 = vpop.permute.xlu0 %658 }
 0x17b   :  { %1030 = vperm.xlu1 %2553, %v4331_v7   ;;  %2045 = vmatmul.mubr.msk.f32.gmra.mrb[38].mxu0 %vm305_vm7, %v4305_v44  ;;  %vm158_vm7 = vcmp.eq.s32.totalorder %v3099_v34, %v4335_v46 }
 0x17d   :  { %v523_v0 = vpop.permute.xlu1 %522 }
 0x17e   :  { %vm556_vm12 = vcmp.eq.s32.totalorder %v3099_v34, %v523_v0  ;;  %v3616_v2 = vpop.permute.xlu0 %667 }
 0x17f   :  { %vm581_vm13 = vmor %vm456_vm10, %vm556_vm12  ;;  %2554 = vset.pattern.permute.xlu1 %v4310_v36  ;;  %vm559_vm10 = vcmp.eq.s32.totalorder %v3099_v34, %v3232_v55  ;;  %v4337_v55 = vld [vmem:[#allocation15_spill] sm:$0xff] }
 0x180   :  { %655 = vperm.xlu1 %2554, %v2622_v41   ;;  %2046 = vmatprep.mubr.msk.f32.mxu0 %vm581_vm13, %v4305_v44  ;;  %vm159_vm13 = vcmp.eq.s32.totalorder %v3099_v34, %v4336_v58  ;;  %v2628_v41 = vld [vmem:[%s4217_s0 + $0x60] sm:$0xff] }
 0x181   :  { %2047 = vmatmul.mubr.msk.f32.gmra.mrb[40].mxu0 %vm306_vm11, %v4305_v44 }
 0x182   :  { %v426_v49 = vpop.permute.xlu1 %425  ;;  %v3626_v15 = vpop.permute.xlu0 %676 }
 0x183   :  { %vm457_vm15 = vcmp.eq.s32.totalorder %v3099_v34, %v426_v49 }
 0x184   :  { %2556 = vset.pattern.permute.xlu1 %v4299_v21 }
 0x185   :  { %933 = vperm.xlu1 %2556, %v2623_v29  }
 0x186   :  { %v1019_v27 = vpop.permute.xlu0 %1018 }
 0x187   :  { %v526_v33 = vpop.permute.xlu1 %525 }
 0x188   :  { %vm557_vm0 = vcmp.eq.s32.totalorder %v3099_v34, %v526_v33 }
 0x189   :  { %vm582_vm2 = vmor %vm457_vm15, %vm557_vm0  ;;  %2557 = vset.pattern.permute.xlu1 %v4307_v43  ;;  %vm460_vm0 = vcmp.eq.s32.totalorder %v3099_v34, %v3535_v17 }
 0x18a   :  { %1033 = vperm.xlu1 %2557, %v4334_v63   ;;  %2048 = vmatprep.mubr.msk.f32.mxu0 %vm582_vm2, %v4305_v44  ;;  %v3645_v10 = vpop.permute.xlu0 %1027 }
 0x18b   :  { %2049 = vmatmul.mubr.msk.f32.gmra.mrb[42].mxu0 %vm307_vm3, %v4305_v44  ;;  %vm160_vm3 = vcmp.eq.s32.totalorder %v3099_v34, %v4338_v9 }
 0x18c   :  { %v429_v53 = vpop.permute.xlu1 %428 }
 0x18d   :  { %vm458_vm5 = vcmp.eq.s32.totalorder %v3099_v34, %v429_v53 }
 0x18e   :  { %vm583_vm6 = vmor %vm458_vm5, %vm558_vm4  ;;  %2558 = vset.pattern.permute.xlu1 %v4306_v39  ;;  %v3651_v59 = vpop.permute.xlu0 %1036 }
 0x18f   :  { %758 = vperm.xlu1 %2558, %v4334_v63   ;;  %2050 = vmatprep.mubr.msk.f32.mxu0 %vm583_vm6, %v4305_v44  ;;  %vm986_vm6 = vcmp.eq.s32.totalorder %v3099_v34, %v3542_v50 }
 0x191   :  { %v254_v5 = vpop.permute.xlu1 %253 }
 0x192   :  { %vm283_vm8 = vcmp.eq.s32.totalorder %v3099_v34, %v254_v5  ;;  %v3661_v50 = vpop.permute.xlu0 %1045 }
 0x193   :  { %vm308_vm9 = vmor %vm158_vm7, %vm283_vm8  ;;  %2559 = vset.pattern.permute.xlu1 %v4299_v21 }
 0x194   :  { %936 = vperm.xlu1 %2559, %v2624_v38   ;;  %2051 = vmatmul.mubr.msk.f32.gmra.mrb[44].mxu0 %vm308_vm9, %v4305_v44  ;;  %vm811_vm9 = vcmp.eq.s32.totalorder %v3099_v34, %v3551_v16  ;;  %v4340_v16 = vld [vmem:[#allocation8_spill] sm:$0xff] }
 0x196   :  { %v432_v42 = vpop.permute.xlu1 %431  ;;  %v3669_v14 = vpop.permute.xlu0 %1054 }
 0x197   :  { %vm459_vm11 = vcmp.eq.s32.totalorder %v3099_v34, %v432_v42 }
 0x198   :  { %vm584_vm12 = vmor %vm459_vm11, %vm559_vm10  ;;  %2560 = vset.pattern.permute.xlu1 %v4310_v36 }
 0x199   :  { %661 = vperm.xlu1 %2560, %v2624_v38   ;;  %2052 = vmatprep.mubr.msk.f32.mxu0 %vm584_vm12, %v4305_v44  ;;  %v2631_v38 = vld [vmem:[%s4217_s0 + $0x78] sm:$0xff] }
 0x19a   :  { %v3675_v30 = vpop.permute.xlu0 %1063 }
 0x19b   :  { %v257_v48 = vpop.permute.xlu1 %256 }
 0x19c   :  { %vm284_vm14 = vcmp.eq.s32.totalorder %v3099_v34, %v257_v48  ;;  %v4343_v48 = vld [vmem:[#allocation10_spill] sm:$0xff] }
 0x19d   :  { %vm309_vm15 = vmor %vm159_vm13, %vm284_vm14  ;;  %2561 = vset.pattern.permute.xlu1 %v4306_v39 }
 0x19e   :  { %761 = vperm.xlu1 %2561, %v4337_v55   ;;  %2053 = vmatmul.mubr.msk.f32.gmra.mrb[46].mxu0 %vm309_vm15, %v4305_v44  ;;  %vm712_vm15 = vcmp.eq.s32.totalorder %v3099_v34, %v3587_v19  ;;  %v922_v0 = vpop.permute.xlu0 %921  ;;  %v4342_v19 = vld [vmem:[#allocation30_spill] sm:$0xff] }
 0x1a0   :  { %v535_v61 = vpop.permute.xlu1 %534 }
 0x1a1   :  { %vm560_vm1 = vcmp.eq.s32.totalorder %v3099_v34, %v535_v61  ;;  %v2632_v61 = vld [vmem:[%s4217_s0 + $0x88] sm:$0xff] }
 0x1a2   :  { %vm585_vm2 = vmor %vm460_vm0, %vm560_vm1  ;;  %2562 = vset.pattern.permute.xlu1 %v4307_v43 }
 0x1a3   :  { %1039 = vperm.xlu1 %2562, %v3008_v8   ;;  %2054 = vmatprep.mubr.msk.f32.mxu0 %vm585_vm2, %v4305_v44  ;;  %vm1088_vm2 = vcmp.eq.s32.totalorder %v3099_v34, %v1019_v27 }
 0x1a5   :  { %v260_v23 = vpop.permute.xlu1 %259 }
 0x1a6   :  { %vm285_vm4 = vcmp.eq.s32.totalorder %v3099_v34, %v260_v23 }
 0x1a7   :  { %vm310_vm5 = vmor %vm160_vm3, %vm285_vm4  ;;  %2563 = vset.pattern.permute.xlu1 %v4310_v36 }
 0x1a8   :  { %664 = vperm.xlu1 %2563, %v2625_v13   ;;  %2055 = vmatmul.mubr.msk.f32.gmra.mrb[48].mxu0 %vm310_vm5, %v4305_v44 }
 0x1aa   :  { %v1013_v8 = vpop.permute.xlu1 %1012 }
 0x1ab   :  { %vm1086_vm7 = vcmp.eq.s32.totalorder %v3099_v34, %v1013_v8 }
 0x1ac   :  { %vm1111_vm8 = vmor %vm986_vm6, %vm1086_vm7  ;;  %2564 = vset.pattern.permute.xlu1 %v4299_v21 }
 0x1ad   :  { %942 = vperm.xlu1 %2564, %v2626_v24   ;;  %2056 = vmatprep.mubr.msk.f32.mxu0 %vm1111_vm8, %v4305_v44  ;;  %vm989_vm8 = vcmp.eq.s32.totalorder %v3099_v34, %v922_v0 }
 0x1af   :  { %v638_v28 = vpop.permute.xlu1 %637 }
 0x1b0   :  { %vm711_vm10 = vcmp.eq.s32.totalorder %v3099_v34, %v638_v28 }
 0x1b1   :  { %vm836_vm11 = vmor %vm711_vm10, %vm811_vm9  ;;  %2565 = vset.pattern.permute.xlu1 %v4307_v43 }
 0x1b2   :  { %1042 = vperm.xlu1 %2565, %v4339_v11   ;;  %2057 = vmatmul.mubr.msk.f32.vlgmr.msra.gmra.mrb[0].mxu0 %vm836_vm11, %v4305_v44  ;;  %vm814_vm11 = vcmp.eq.s32.totalorder %v3099_v34, %v3566_v26  ;;  %v2630_v26 = vld [vmem:[%s4217_s0 + $0x70] sm:$0xff] }
 0x1b4   :  { %v916_v52 = vpop.permute.xlu1 %915 }
 0x1b5   :  { %vm987_vm12 = vcmp.eq.s32.totalorder %v3099_v34, %v916_v52  ;;  %v2633_v52 = vld [vmem:[%s4217_s0 + $0x90] sm:$0xff] }
 0x1b6   :  { %2566 = vset.pattern.permute.xlu1 %v4306_v39 }
 0x1b7   :  { %767 = vperm.xlu1 %2566, %v4339_v11  }
 0x1b9   :  { %v1016_v17 = vpop.permute.xlu1 %1015 }
 0x1ba   :  { %vm1087_vm13 = vcmp.eq.s32.totalorder %v3099_v34, %v1016_v17 }
 0x1bb   :  { %vm1112_vm14 = vmor %vm987_vm12, %vm1087_vm13  ;;  %2567 = vset.pattern.permute.xlu1 %v4299_v21 }
 0x1bc   :  { %945 = vperm.xlu1 %2567, %v2627_v6   ;;  %2058 = vmatprep.mubr.msk.f32.mxu0 %vm1112_vm14, %v4305_v44 }
 0x1be   :  { %v741_v32 = vpop.permute.xlu1 %740 }
 0x1bf   :  { %vm812_vm0 = vcmp.eq.s32.totalorder %v3099_v34, %v741_v32 }
 0x1c0   :  { %vm837_vm1 = vmor %vm712_vm15, %vm812_vm0  ;;  %2568 = vset.pattern.permute.xlu1 %v4310_v36 }
 0x1c1   :  { %670 = vperm.xlu1 %2568, %v2627_v6   ;;  %2059 = vmatmul.mubr.msk.f32.gmra.mrb[2].mxu0 %vm837_vm1, %v4305_v44  ;;  %vm715_vm1 = vcmp.eq.s32.totalorder %v3099_v34, %v3596_v12  ;;  %v931_v12 = vpop.permute.xlu0 %930 }
 0x1c3   :  { %v919_v35 = vpop.permute.xlu1 %918 }
 0x1c4   :  { %vm988_vm3 = vcmp.eq.s32.totalorder %v3099_v34, %v919_v35 }
 0x1c5   :  { %vm1113_vm4 = vmor %vm988_vm3, %vm1088_vm2  ;;  %2569 = vset.pattern.permute.xlu1 %v4306_v39  ;;  %v940_v55 = vpop.permute.xlu0 %939 }
 0x1c6   :  { %770 = vperm.xlu1 %2569, %v4340_v16   ;;  %2060 = vmatprep.mubr.msk.f32.mxu0 %vm1113_vm4, %v4305_v44  ;;  %vm1091_vm4 = vcmp.eq.s32.totalorder %v3099_v34, %v3645_v10 }
 0x1c8   :  { %v644_v25 = vpop.permute.xlu1 %643 }
 0x1c9   :  { %vm713_vm5 = vcmp.eq.s32.totalorder %v3099_v34, %v644_v25  ;;  %v4345_v25 = vld [vmem:[#allocation36_spill] sm:$0xff] }
 0x1ca   :  { %2570 = vset.pattern.permute.xlu1 %v4307_v43 }
 0x1cb   :  { %1048 = vperm.xlu1 %2570, %v2969_v51   ;;  %v2629_v51 = vld [vmem:[%s4217_s0 + $0x68] sm:$0xff] }
 0x1cd   :  { %v744_v7 = vpop.permute.xlu1 %743 }
 0x1ce   :  { %vm813_vm6 = vcmp.eq.s32.totalorder %v3099_v34, %v744_v7 }
 0x1cf   :  { %vm838_vm7 = vmor %vm713_vm5, %vm813_vm6  ;;  %2571 = vset.pattern.permute.xlu1 %v4310_v36 }
 0x1d0   :  { %673 = vperm.xlu1 %2571, %v2628_v41   ;;  %2061 = vmatmul.mubr.msk.f32.gmra.mrb[4].mxu0 %vm838_vm7, %v4305_v44 }
 0x1d2   :  { %v1022_v49 = vpop.permute.xlu1 %1021 }
 0x1d3   :  { %vm1089_vm9 = vcmp.eq.s32.totalorder %v3099_v34, %v1022_v49  ;;  %v2634_v49 = vld [vmem:[%s4217_s0 + $0xa0] sm:$0xff] }
 0x1d4   :  { %vm1114_vm10 = vmor %vm989_vm8, %vm1089_vm9  ;;  %2572 = vset.pattern.permute.xlu1 %v4299_v21 }
 0x1d5   :  { %951 = vperm.xlu1 %2572, %v2629_v51   ;;  %2062 = vmatprep.mubr.msk.f32.mxu0 %vm1114_vm10, %v4305_v44  ;;  %vm992_vm10 = vcmp.eq.s32.totalorder %v3099_v34, %v931_v12 }
 0x1d7   :  { %v647_v29 = vpop.permute.xlu1 %646 }
 0x1d8   :  { %vm714_vm12 = vcmp.eq.s32.totalorder %v3099_v34, %v647_v29 }
 0x1d9   :  { %vm839_vm13 = vmor %vm714_vm12, %vm814_vm11  ;;  %2573 = vset.pattern.permute.xlu1 %v4307_v43 }
 0x1da   :  { %1051 = vperm.xlu1 %2573, %v4341_v4   ;;  %2063 = vmatmul.mubr.msk.f32.gmra.mrb[6].mxu0 %vm839_vm13, %v4305_v44  ;;  %vm817_vm13 = vcmp.eq.s32.totalorder %v3099_v34, %v3573_v31  ;;  %v3744_v31 = vpop.permute.xlu0 %948 }
 0x1dc   :  { %v925_v33 = vpop.permute.xlu1 %924 }
 0x1dd   :  { %vm990_vm14 = vcmp.eq.s32.totalorder %v3099_v34, %v925_v33 }
 0x1de   :  { %2575 = vset.pattern.permute.xlu1 %v4306_v39  ;;  %v3755_v23 = vpop.permute.xlu0 %957 }
 0x1df   :  { %776 = vperm.xlu1 %2575, %v4341_v4  }
 0x1e1   :  { %v1025_v18 = vpop.permute.xlu1 %1024 }
 0x1e2   :  { %vm1090_vm15 = vcmp.eq.s32.totalorder %v3099_v34, %v1025_v18  ;;  %v3763_v8 = vpop.permute.xlu0 %966 }
 0x1e3   :  { %vm1115_vm0 = vmor %vm990_vm14, %vm1090_vm15  ;;  %2576 = vset.pattern.permute.xlu1 %v4299_v21 }
 0x1e4   :  { %954 = vperm.xlu1 %2576, %v2630_v26   ;;  %2064 = vmatprep.mubr.msk.f32.mxu0 %vm1115_vm0, %v4305_v44 }
 0x1e6   :  { %v750_v63 = vpop.permute.xlu1 %749  ;;  %v3767_v28 = vpop.permute.xlu0 %975 }
 0x1e7   :  { %vm815_vm2 = vcmp.eq.s32.totalorder %v3099_v34, %v750_v63 }
 0x1e8   :  { %vm840_vm3 = vmor %vm715_vm1, %vm815_vm2  ;;  %2577 = vset.pattern.permute.xlu1 %v4310_v36 }
 0x1e9   :  { %679 = vperm.xlu1 %2577, %v2630_v26   ;;  %2065 = vmatmul.mubr.msk.f32.gmra.mrb[8].mxu0 %vm840_vm3, %v4305_v44  ;;  %vm718_vm3 = vcmp.eq.s32.totalorder %v3099_v34, %v3607_v54  ;;  %v4344_v54 = vld [vmem:[#allocation17_spill] sm:$0xff] }
 0x1ea   :  { %v765_v6 = vpop.permute.xlu0 %764 }
 0x1eb   :  { %v928_v53 = vpop.permute.xlu1 %927 }
 0x1ec   :  { %vm991_vm5 = vcmp.eq.s32.totalorder %v3099_v34, %v928_v53 }
 0x1ed   :  { %vm1116_vm6 = vmor %vm991_vm5, %vm1091_vm4  ;;  %2578 = vset.pattern.permute.xlu1 %v4306_v39 }
 0x1ee   :  { %779 = vperm.xlu1 %2578, %v4342_v19   ;;  %2066 = vmatprep.mubr.msk.f32.mxu0 %vm1116_vm6, %v4305_v44  ;;  %vm1094_vm6 = vcmp.eq.s32.totalorder %v3099_v34, %v3651_v59  ;;  %v774_v63 = vpop.permute.xlu0 %773 }
 0x1f0   :  { %v653_v46 = vpop.permute.xlu1 %652 }
 0x1f1   :  { %vm716_vm7 = vcmp.eq.s32.totalorder %v3099_v34, %v653_v46 }
 0x1f2   :  { %2579 = vset.pattern.permute.xlu1 %v4307_v43 }
 0x1f3   :  { %1057 = vperm.xlu1 %2579, %v2919_v37  }
 0x1f5   :  { %v753_v5 = vpop.permute.xlu1 %752 }
 0x1f6   :  { %vm816_vm8 = vcmp.eq.s32.totalorder %v3099_v34, %v753_v5 }
 0x1f7   :  { %vm841_vm9 = vmor %vm716_vm7, %vm816_vm8  ;;  %2580 = vset.pattern.permute.xlu1 %v4310_v36 }
 0x1f8   :  { %682 = vperm.xlu1 %2580, %v2631_v38   ;;  %2067 = vmatmul.mubr.msk.f32.gmra.mrb[10].mxu0 %vm841_vm9, %v4305_v44 }
 0x1fa   :  { %v1031_v42 = vpop.permute.xlu1 %1030 }
 0x1fb   :  { %vm1092_vm11 = vcmp.eq.s32.totalorder %v3099_v34, %v1031_v42  ;;  %v1662_v42 = vld [vmem:[%s4220_s3] sm:$0xff] }
 0x1fc   :  { %vm1117_vm12 = vmor %vm992_vm10, %vm1092_vm11  ;;  %2581 = vset.pattern.permute.xlu1 %v4299_v21 }
 0x1fd   :  { %960 = vperm.xlu1 %2581, %v3413_v22   ;;  %2068 = vmatprep.mubr.msk.f32.mxu0 %vm1117_vm12, %v4305_v44  ;;  %vm995_vm12 = vcmp.eq.s32.totalorder %v3099_v34, %v940_v55 }
 0x1ff   :  { %v656_v37 = vpop.permute.xlu1 %655 }
 0x200   :  { %vm717_vm14 = vcmp.eq.s32.totalorder %v3099_v34, %v656_v37  ;;  %v1663_v37 = vld [vmem:[%s4220_s3 + $0x8] sm:$0xff] }
 0x201   :  { %vm842_vm15 = vmor %vm717_vm14, %vm817_vm13  ;;  %2582 = vset.pattern.permute.xlu1 %v4307_v43 }
 0x202   :  { %1060 = vperm.xlu1 %2582, %v4343_v48   ;;  %2069 = vmatmul.mubr.msk.f32.gmra.mrb[12].mxu0 %vm842_vm15, %v4305_v44  ;;  %vm820_vm15 = vcmp.eq.s32.totalorder %v3099_v34, %v765_v6  ;;  %v1673_v6 = vld [vmem:[%s4220_s3 + $0x58] sm:$0xff] }
 0x204   :  { %v934_v58 = vpop.permute.xlu1 %933 }
 0x205   :  { %vm993_vm0 = vcmp.eq.s32.totalorder %v3099_v34, %v934_v58  ;;  %v2352_v58 = vpack.c.bf16 %v1663_v37, %v1662_v42 }
 0x206   :  { %2583 = vset.pattern.permute.xlu1 %v4306_v39 }
 0x207   :  { %785 = vperm.xlu1 %2583, %v4343_v48  }
 0x209   :  { %v1034_v22 = vpop.permute.xlu1 %1033 }
 0x20a   :  { %vm1093_vm1 = vcmp.eq.s32.totalorder %v3099_v34, %v1034_v22  ;;  %v1664_v22 = vld [vmem:[%s4220_s3 + $0x10] sm:$0xff] }
 0x20b   :  { %vm1118_vm2 = vmor %vm993_vm0, %vm1093_vm1  ;;  %2584 = vset.pattern.permute.xlu1 %v4299_v21 }
 0x20c   :  { %963 = vperm.xlu1 %2584, %v2632_v61   ;;  %2070 = vmatprep.mubr.msk.f32.mxu0 %vm1118_vm2, %v4305_v44 }
 0x20e   :  { %v759_v9 = vpop.permute.xlu1 %758 }
 0x20f   :  { %vm818_vm4 = vcmp.eq.s32.totalorder %v3099_v34, %v759_v9  ;;  %v1666_v9 = vld [vmem:[%s4220_s3 + $0x20] sm:$0xff] }
 0x210   :  { %vm843_vm5 = vmor %vm718_vm3, %vm818_vm4  ;;  %2586 = vset.pattern.permute.xlu1 %v4310_v36 }
 0x211   :  { %688 = vperm.xlu1 %2586, %v2632_v61   ;;  %2071 = vmatmul.mubr.msk.f32.gmra.mrb[14].mxu0 %vm843_vm5, %v4305_v44  ;;  %vm721_vm5 = vcmp.eq.s32.totalorder %v3099_v34, %v3616_v2 }
 0x213   :  { %v937_v13 = vpop.permute.xlu1 %936 }
 0x214   :  { %vm994_vm7 = vcmp.eq.s32.totalorder %v3099_v34, %v937_v13  ;;  %v1667_v13 = vld [vmem:[%s4220_s3 + $0x28] sm:$0xff] }
 0x215   :  { %vm1119_vm8 = vmor %vm994_vm7, %vm1094_vm6  ;;  %2587 = vset.pattern.permute.xlu1 %v4306_v39 }
 0x216   :  { %788 = vperm.xlu1 %2587, %v4344_v54   ;;  %2072 = vmatprep.mubr.msk.f32.mxu0 %vm1119_vm8, %v4305_v44  ;;  %vm1097_vm8 = vcmp.eq.s32.totalorder %v3099_v34, %v3661_v50  ;;  %v2358_v54 = vpack.c.bf16 %v1667_v13, %v1666_v9 }
 0x218   :  { %v662_v27 = vpop.permute.xlu1 %661 }
 0x219   :  { %vm719_vm9 = vcmp.eq.s32.totalorder %v3099_v34, %v662_v27 }
 0x21a   :  { %2588 = vset.pattern.permute.xlu1 %v4307_v43 }
 0x21b   :  { %1066 = vperm.xlu1 %2588, %v2986_v56  }
 0x21d   :  { %v762_v24 = vpop.permute.xlu1 %761 }
 0x21e   :  { %vm819_vm10 = vcmp.eq.s32.totalorder %v3099_v34, %v762_v24  ;;  %v3771_v10 = vpop.f32.mrb[26].mxu0 }
 0x21f   :  { %vm844_vm11 = vmor %vm719_vm9, %vm819_vm10  ;;  %v1390_v11 = vpop.f32.mrb[27].mxu0  ;;  %2589 = vset.pattern.permute.xlu1 %v4310_v36 }
 0x220   :  { %691 = vperm.xlu1 %2589, %v2633_v52   ;;  %2073 = vmatmul.mubr.msk.f32.gmra.mrb[16].mxu0 %vm844_vm11, %v4305_v44  ;;  %v1668_v11 = vld [vmem:[%s4220_s3 + $0x30] sm:$0xff]  ;;  %v1670_v52 = vld [vmem:[%s4220_s3 + $0x40] sm:$0xff] }
 0x222   :  { %v3779_v56 = vpop.f32.mrb[28].mxu0  ;;  %v1040_v59 = vpop.permute.xlu1 %1039 }
 0x223   :  { %vm1095_vm13 = vcmp.eq.s32.totalorder %v3099_v34, %v1040_v59  ;;  %v1395_v17 = vpop.f32.mrb[29].mxu0  ;;  %v1671_v59 = vld [vmem:[%s4220_s3 + $0x48] sm:$0xff] }
 0x224   :  { %vm1120_vm14 = vmor %vm995_vm12, %vm1095_vm13  ;;  %2590 = vset.pattern.permute.xlu1 %v4299_v21 }
 0x225   :  { %969 = vperm.xlu1 %2590, %v3427_v62   ;;  %2074 = vmatprep.mubr.msk.f32.mxu0 %vm1120_vm14, %v4305_v44  ;;  %vm998_vm14 = vcmp.eq.s32.totalorder %v3099_v34, %v3744_v31  ;;  %v1665_v31 = vld [vmem:[%s4220_s3 + $0x18] sm:$0xff] }
 0x226   :  { %v2355_v61 = vpack.c.bf16 %v1665_v31, %v1664_v22 }
 0x227   :  { %v3786_v32 = vpop.f32.mrb[30].mxu0  ;;  %v665_v35 = vpop.permute.xlu1 %664 }
 0x228   :  { %vm720_vm0 = vcmp.eq.s32.totalorder %v3099_v34, %v665_v35  ;;  %v1400_v16 = vpop.f32.mrb[31].mxu0 }
 0x229   :  { %vm845_vm1 = vmor %vm720_vm0, %vm820_vm15  ;;  %2591 = vset.pattern.permute.xlu1 %v4307_v43 }
 0x22a   :  { %1069 = vperm.xlu1 %2591, %v4345_v25   ;;  %2075 = vmatmul.mubr.msk.f32.gmra.mrb[18].mxu0 %vm845_vm1, %v4305_v44  ;;  %vm823_vm1 = vcmp.eq.s32.totalorder %v3099_v34, %v774_v63 }
 0x22c   :  { %v943_v7 = vpop.permute.xlu1 %942 }
 0x22d   :  { %vm996_vm2 = vcmp.eq.s32.totalorder %v3099_v34, %v943_v7  ;;  %v1674_v7 = vld [vmem:[%s4220_s3 + $0x60] sm:$0xff] }
 0x22e   :  { %2592 = vset.pattern.permute.xlu1 %v4306_v39 }
 0x22f   :  { %794 = vperm.xlu1 %2592, %v4345_v25  }
 0x231   :  { %v1043_v62 = vpop.permute.xlu1 %1042  ;;  %v3794_v0 = vpop.f32.mrb[32].mxu0 }
 0x232   :  { %vm1096_vm3 = vcmp.eq.s32.totalorder %v3099_v34, %v1043_v62  ;;  %v1405_v41 = vpop.f32.mrb[33].mxu0 }
 0x233   :  { %vm1121_vm4 = vmor %vm996_vm2, %vm1096_vm3  ;;  %2593 = vset.pattern.permute.xlu1 %v4299_v21 }
 0x234   :  { %972 = vperm.xlu1 %2593, %v2634_v49   ;;  %2076 = vmatprep.mubr.msk.f32.mxu0 %vm1121_vm4, %v4305_v44 }
 0x236   :  { %v768_v51 = vpop.permute.xlu1 %767 }
 0x237   :  { %vm821_vm6 = vcmp.eq.s32.totalorder %v3099_v34, %v768_v51  ;;  %v1676_v51 = vld [vmem:[%s4220_s3 + $0x70] sm:$0xff] }
 0x238   :  { %vm846_vm7 = vmor %vm721_vm5, %vm821_vm6  ;;  %2594 = vset.pattern.permute.xlu1 %v4310_v36 }
 0x239   :  { %697 = vperm.xlu1 %2594, %v2634_v49   ;;  %2077 = vmatmul.mubr.msk.f32.gmra.mrb[20].mxu0 %vm846_vm7, %v4305_v44  ;;  %vm724_vm7 = vcmp.eq.s32.totalorder %v3099_v34, %v3626_v15 }
 0x23a   :  { %v3810_v29 = vpop.f32.mrb[34].mxu0 }
 0x23b   :  { %v1410_v4 = vpop.f32.mrb[35].mxu0  ;;  %v946_v33 = vpop.permute.xlu1 %945 }
 0x23c   :  { %vm997_vm9 = vcmp.eq.s32.totalorder %v3099_v34, %v946_v33  ;;  %v1677_v4 = vld [vmem:[%s4220_s3 + $0x78] sm:$0xff] }
 0x23d   :  { %vm1122_vm10 = vmor %vm997_vm9, %vm1097_vm8  ;;  %2595 = vset.pattern.permute.xlu1 %v4306_v39 }
 0x23e   :  { %797 = vperm.xlu1 %2595, %v4313_v20   ;;  %2078 = vmatprep.mubr.msk.f32.mxu0 %vm1122_vm10, %v4305_v44  ;;  %v2635_v20 = vld [vmem:[%s4217_s0 + $0xa8] sm:$0xff]  ;;  %vm1100_vm10 = vcmp.eq.s32.totalorder %v3099_v34, %v3669_v14 }
 0x240   :  { %v671_v2 = vpop.permute.xlu1 %670 }
 0x241   :  { %vm722_vm11 = vcmp.eq.s32.totalorder %v3099_v34, %v671_v2 }
 0x242   :  { %2597 = vset.pattern.permute.xlu1 %v4307_v43 }
 0x243   :  { %1075 = vperm.xlu1 %2597, %v2942_v45  }
 0x244   :  { %v3818_v18 = vpop.f32.mrb[36].mxu0 }
 0x245   :  { %v1415_v50 = vpop.f32.mrb[37].mxu0  ;;  %v771_v26 = vpop.permute.xlu1 %770 }
 0x246   :  { %vm822_vm12 = vcmp.eq.s32.totalorder %v3099_v34, %v771_v26  ;;  %v2373_v50 = vpack.c.bf16 %v1677_v4, %v1676_v51  ;;  %v4014_v4 = vld [vmem:[%s4219_s2] ss:$0 sm:$0xff] }
 0x247   :  { %vm847_vm13 = vmor %vm722_vm11, %vm822_vm12  ;;  %2598 = vset.pattern.permute.xlu1 %v4310_v36 }
 0x248   :  { %700 = vperm.xlu1 %2598, %v2635_v20   ;;  %2079 = vmatmul.mubr.msk.f32.gmra.mrb[22].mxu0 %vm847_vm13, %v4305_v44 }
 0x24a   :  { %v1049_v45 = vpop.permute.xlu1 %1048 }
 0x24b   :  { %vm1098_vm15 = vcmp.eq.s32.totalorder %v3099_v34, %v1049_v45 }
 0x24c   :  { %vm1123_vm0 = vmor %vm998_vm14, %vm1098_vm15  ;;  %2600 = vset.pattern.permute.xlu1 %v4299_v21 }
 0x24d   :  { %978 = vperm.xlu1 %2600, %v3443_v1   ;;  %2080 = vmatprep.mubr.msk.f32.mxu0 %vm1123_vm0, %v4305_v44  ;;  %vm1001_vm0 = vcmp.eq.s32.totalorder %v3099_v34, %v3755_v23  ;;  %v1675_v23 = vld [vmem:[%s4220_s3 + $0x68] sm:$0xff] }
 0x24e   :  { %v3833_v53 = vpop.f32.mrb[38].mxu0  ;;  %v2370_v49 = vpack.c.bf16 %v1675_v23, %v1674_v7 }
 0x24f   :  { %v1420_v19 = vpop.f32.mrb[39].mxu0  ;;  %v674_v46 = vpop.permute.xlu1 %673 }
 0x250   :  { %vm723_vm2 = vcmp.eq.s32.totalorder %v3099_v34, %v674_v46 }
 0x251   :  { %vm848_vm3 = vmor %vm723_vm2, %vm823_vm1  ;;  %2601 = vset.pattern.permute.xlu1 %v4307_v43 }
 0x252   :  { %1078 = vperm.xlu1 %2601, %v2992_v57   ;;  %2081 = vmatmul.mubr.msk.f32.gmra.mrb[24].mxu0 %vm848_vm3, %v4305_v44 }
 0x254   :  { %v952_v5 = vpop.permute.xlu1 %951  ;;  %v3840_v12 = vpop.f32.mrb[40].mxu0 }
 0x255   :  { %v1425_v1 = vpop.f32.mrb[41].mxu0  ;;  %vm999_vm4 = vcmp.eq.s32.totalorder %v3099_v34, %v952_v5 }
 0x256   :  { %2603 = vset.pattern.permute.xlu1 %v4306_v39 }
 0x257   :  { %803 = vperm.xlu1 %2603, %v2992_v57   ;;  %v2636_v57 = vld [vmem:[%s4217_s0 + $0xb8] sm:$0xff] }
 0x259   :  { %v1052_v38 = vpop.permute.xlu1 %1051 }
 0x25a   :  { %vm1099_vm5 = vcmp.eq.s32.totalorder %v3099_v34, %v1052_v38 }
 0x25b   :  { %2604 = vset.pattern.permute.xlu1 %v4299_v21  ;;  %vm1124_vm6 = vmor %vm999_vm4, %vm1099_vm5 }
 0x25c   :  { %981 = vperm.xlu1 %2604, %v2636_v57   ;;  %2082 = vmatprep.mubr.msk.f32.mxu1 %vm1124_vm6, %v4305_v44 }
 0x25e   :  { %v3859_v21 = vpop.f32.mrb[42].mxu0  ;;  %v777_v48 = vpop.permute.xlu1 %776 }
 0x25f   :  { %vm824_vm8 = vcmp.eq.s32.totalorder %v3099_v34, %v777_v48  ;;  %v1430_v55 = vpop.f32.mrb[43].mxu0 }
 0x260   :  { %vm849_vm9 = vmor %vm724_vm7, %vm824_vm8  ;;  %2605 = vset.pattern.permute.xlu1 %v4310_v36 }
 0x261   :  { %706 = vperm.xlu1 %2605, %v2636_v57   ;;  %2083 = vmatmul.mubr.msk.f32.vlgmr.msra.gmra.mrb[0].mxu1 %vm849_vm9, %v4305_v44 }
 0x262   :  { %2353 = vmatpush3.bf16.msra.mxu1 %v2352_v58 }
 0x263   :  { %v955_v15 = vpop.permute.xlu1 %954  ;;  %2354 = vmatprep.subr.bf16.mxu1 %v4298_v40 }
 0x264   :  { %vm1000_vm11 = vcmp.eq.s32.totalorder %v3099_v34, %v955_v15 }
 0x265   :  { %vm1125_vm12 = vmor %vm1000_vm11, %vm1100_vm10  ;;  %2606 = vset.pattern.permute.xlu1 %v4306_v39  ;;  %v1669_v39 = vld [vmem:[%s4220_s3 + $0x38] sm:$0xff] }
 0x266   :  { %806 = vperm.xlu1 %2606, %v2997_v60   ;;  %2084 = vmatprep.mubr.msk.f32.mxu1 %vm1125_vm12, %v4305_v44  ;;  %v2361_v60 = vpack.c.bf16 %v1669_v39, %v1668_v11  ;;  %vm1103_vm12 = vcmp.eq.s32.totalorder %v3099_v34, %v3675_v30 }
 0x267   :  { %v3883_v14 = vpop.f32.mrb[44].mxu0  ;;  %2356 = vmatpush3.bf16.msra.mxu1 %v2355_v61 }
 0x268   :  { %v1435_v27 = vpop.f32.mrb[45].mxu0  ;;  %v680_v24 = vpop.permute.xlu1 %679  ;;  %2357 = vmatprep.subr.bf16.mxu1 %v4298_v40 }
 0x269   :  { %vm725_vm13 = vcmp.eq.s32.totalorder %v3099_v34, %v680_v24 }
 0x26a   :  { %2608 = vset.pattern.permute.xlu1 %v4307_v43  ;;  %v1672_v43 = vld [vmem:[%s4220_s3 + $0x50] sm:$0xff] }
 0x26b   :  { %1084 = vperm.xlu1 %2608, %v3276_v3   ;;  %2359 = vmatpush3.bf16.msra.mxu1 %v2358_v54  ;;  %v2364_v3 = vpack.c.bf16 %v1671_v59, %v1670_v52  ;;  %v2367_v25 = vpack.c.bf16 %v1673_v6, %v1672_v43 }
 0x26c   :  { %2360 = vmatprep.subr.bf16.mxu1 %v4298_v40 }
 0x26d   :  { %v780_v17 = vpop.permute.xlu1 %779 }
 0x26e   :  { %vm825_vm14 = vcmp.eq.s32.totalorder %v3099_v34, %v780_v17 }
 0x26f   :  { %vm850_vm15 = vmor %vm725_vm13, %vm825_vm14  ;;  %2609 = vset.pattern.permute.xlu1 %v4310_v36  ;;  %2362 = vmatpush3.bf16.msra.mxu1 %v2361_v60  ;;  %v783_v36 = vpop.permute.xlu0 %782 }
 0x270   :  { %709 = vperm.xlu1 %2609, %v3484_v47   ;;  %2085 = vmatmul.mubr.msk.f32.gmra.mrb[2].mxu1 %vm850_vm15, %v4305_v44  ;;  %vm826_vm3 = vcmp.eq.s32.totalorder %v3099_v34, %v783_v36 }
 0x271   :  { %v3914_v35 = vpop.f32.mrb[46].mxu0  ;;  %2363 = vmatprep.subr.bf16.mxu1 %v4298_v40 }
 0x272   :  { %v1440_v16 = vpop.f32.mrb[47].mxu0  ;;  %v1058_v47 = vpop.permute.xlu1 %1057 }
 0x273   :  { %vm1101_vm1 = vcmp.eq.s32.totalorder %v3099_v34, %v1058_v47  ;;  %2365 = vmatpush3.bf16.msra.mxu1 %v2364_v3  ;;  %v792_v62 = vpop.permute.xlu0 %791 }
 0x274   :  { %vm1126_vm2 = vmor %vm1001_vm0, %vm1101_vm1  ;;  %2366 = vmatprep.subr.bf16.mxu1 %v4298_v40 }
 0x275   :  { %2086 = vmatprep.mubr.msk.f32.mxu1 %vm1126_vm2, %v4305_v44  ;;  %vm1004_vm2 = vcmp.eq.s32.totalorder %v3099_v34, %v3763_v8 }
 0x277   :  { %v683_v41 = vpop.permute.xlu1 %682  ;;  %2368 = vmatpush3.bf16.msra.mxu1 %v2367_v25  ;;  %v3938_v2 = vpop.permute.xlu0 %800 }
 0x278   :  { %vm726_vm4 = vcmp.eq.s32.totalorder %v3099_v34, %v683_v41  ;;  %2369 = vmatprep.subr.bf16.mxu1 %v4298_v40 }
 0x279   :  { %vm851_vm5 = vmor %vm726_vm4, %vm826_vm3 }
 0x27a   :  { %2087 = vmatmul.mubr.msk.f32.gmra.mrb[4].mxu1 %vm851_vm5, %v4305_v44  ;;  %vm829_vm5 = vcmp.eq.s32.totalorder %v3099_v34, %v792_v62 }
 0x27b   :  { %v3936_v33 = vpop.f32.mrb[48].mxu0  ;;  %2371 = vmatpush3.bf16.msra.mxu1 %v2370_v49  ;;  %v686_v63 = vpop.permute.xlu0 %685 }
 0x27c   :  { %v1445_v26 = vpop.f32.mrb[49].mxu0  ;;  %v961_v20 = vpop.permute.xlu1 %960  ;;  %2372 = vmatprep.subr.bf16.mxu1 %v4298_v40  ;;  %vm727_vm9 = vcmp.eq.s32.totalorder %v3099_v34, %v686_v63 }
 0x27d   :  { %vm1002_vm6 = vcmp.eq.s32.totalorder %v3099_v34, %v961_v20  ;;  %v2675_v20 = vmov 0.0  }
 0x27f   :  { %2374 = vmatpush3.bf16.msra.mxu1 %v2373_v50  ;;  %v695_v58 = vpop.permute.xlu0 %694 }
 0x281   :  { %v1061_v45 = vpop.permute.xlu1 %1060 }
 0x282   :  { %vm1102_vm7 = vcmp.eq.s32.totalorder %v3099_v34, %v1061_v45 }
 0x283   :  { %vm1127_vm8 = vmor %vm1002_vm6, %vm1102_vm7  ;;  %v704_v8 = vpop.permute.xlu0 %703 }
 0x284   :  { %2088 = vmatprep.mubr.msk.f32.mxu1 %vm1127_vm8, %v4305_v44 }
 0x285   :  { %v3944_v19 = vpop.f32.mrb[0].mxu0 }
 0x286   :  { %v1515_v46 = vpop.f32.mrb[1].mxu0  ;;  %v786_v5 = vpop.permute.xlu1 %785  ;;  %v2407_v50 = vadd.f32 %v4014_v4, %v3944_v19 }
 0x287   :  { %vm827_vm10 = vcmp.eq.s32.totalorder %v3099_v34, %v786_v5  ;;  %v1073_v13 = vpop.permute.xlu0 %1072 }
 0x288   :  { %vm852_vm11 = vmor %vm727_vm9, %vm827_vm10  ;;  %v1637_v45 = vmax.f32 %v2407_v50, 0.0 }
 0x289   :  { %2089 = vmatmul.mubr.msk.f32.gmra.mrb[6].mxu1 %vm852_vm11, %v4305_v44  ;;  %vm730_vm11 = vcmp.eq.s32.totalorder %v3099_v34, %v695_v58 }
 0x28b   :  { %v964_v40 = vpop.permute.xlu1 %963  ;;  %v1082_v16 = vpop.permute.xlu0 %1081 }
 0x28c   :  { %vm1003_vm13 = vcmp.eq.s32.totalorder %v3099_v34, %v964_v40 }
 0x28d   :  { %vm1128_vm14 = vmor %vm1003_vm13, %vm1103_vm12 }
 0x28e   :  { %2090 = vmatprep.mubr.msk.f32.mxu1 %vm1128_vm14, %v4305_v44  ;;  %vm1106_vm14 = vcmp.eq.s32.totalorder %v3099_v34, %v1073_v13 }
 0x28f   :  { %v985_v23 = vpop.permute.xlu0 %984 }
 0x290   :  { %v689_v1 = vpop.permute.xlu1 %688 }
 0x291   :  { %vm728_vm15 = vcmp.eq.s32.totalorder %v3099_v34, %v689_v1 }
 0x293   :  { %v810_v51 = vpop.permute.xlu0 %809 }
 0x294   :  { %v3953_v38 = vpop.f32.mrb[2].mxu0 }
 0x295   :  { %v1520_v42 = vpop.f32.mrb[3].mxu0  ;;  %v789_v37 = vpop.permute.xlu1 %788  ;;  %v2408_v63 = vadd.f32 %v4014_v4, %v3953_v38 }
 0x296   :  { %vm828_vm0 = vcmp.eq.s32.totalorder %v3099_v34, %v789_v37 }
 0x297   :  { %vm853_vm1 = vmor %vm728_vm15, %vm828_vm0  ;;  %v1638_v19 = vmax.f32 %v2408_v63, 0.0 }
 0x298   :  { %2091 = vmatmul.mubr.msk.f32.gmra.mrb[8].mxu1 %vm853_vm1, %v4305_v44 }
 0x29a   :  { %v1067_v57 = vpop.permute.xlu1 %1066 }
 0x29b   :  { %vm1104_vm3 = vcmp.eq.s32.totalorder %v3099_v34, %v1067_v57 }
 0x29c   :  { %vm1129_vm4 = vmor %vm1004_vm2, %vm1104_vm3 }
 0x29d   :  { %2092 = vmatprep.mubr.msk.f32.mxu1 %vm1129_vm4, %v4305_v44  ;;  %vm1007_vm4 = vcmp.eq.s32.totalorder %v3099_v34, %v3767_v28 }
 0x29f   :  { %v692_v30 = vpop.permute.xlu1 %691 }
 0x2a0   :  { %vm729_vm6 = vcmp.eq.s32.totalorder %v3099_v34, %v692_v30 }
 0x2a1   :  { %vm854_vm7 = vmor %vm729_vm6, %vm829_vm5 }
 0x2a2   :  { %2093 = vmatmul.mubr.msk.f32.gmra.mrb[10].mxu1 %vm854_vm7, %v4305_v44  ;;  %vm832_vm7 = vcmp.eq.s32.totalorder %v3099_v34, %v3938_v2 }
 0x2a3   :  { %v3965_v48 = vpop.f32.mrb[4].mxu0 }
 0x2a4   :  { %v1525_v55 = vpop.f32.mrb[5].mxu0  ;;  %v970_v22 = vpop.permute.xlu1 %969 }
 0x2a5   :  { %vm1005_vm8 = vcmp.eq.s32.totalorder %v3099_v34, %v970_v22 }
 0x2a9   :  { %v1070_v31 = vpop.permute.xlu1 %1069 }
 0x2aa   :  { %vm1105_vm9 = vcmp.eq.s32.totalorder %v3099_v34, %v1070_v31 }
 0x2ab   :  { %vm1130_vm10 = vmor %vm1005_vm8, %vm1105_vm9 }
 0x2ac   :  { %2094 = vmatprep.mubr.msk.f32.mxu1 %vm1130_vm10, %v4305_v44 }
 0x2ad   :  { %v3971_v15 = vpop.f32.mrb[6].mxu0 }
 0x2ae   :  { %v1530_v61 = vpop.f32.mrb[7].mxu0  ;;  %v795_v9 = vpop.permute.xlu1 %794  ;;  %v2410_v5 = vadd.f32 %v4014_v4, %v3971_v15 }
 0x2af   :  { %vm830_vm12 = vcmp.eq.s32.totalorder %v3099_v34, %v795_v9 }
 0x2b0   :  { %vm855_vm13 = vmor %vm730_vm11, %vm830_vm12  ;;  %v1640_v38 = vmax.f32 %v2410_v5, 0.0 }
 0x2b1   :  { %2095 = vmatmul.mubr.msk.f32.gmra.mrb[12].mxu1 %vm855_vm13, %v4305_v44  ;;  %vm733_vm13 = vcmp.eq.s32.totalorder %v3099_v34, %v704_v8 }
 0x2b3   :  { %v973_v54 = vpop.permute.xlu1 %972 }
 0x2b4   :  { %vm1006_vm15 = vcmp.eq.s32.totalorder %v3099_v34, %v973_v54 }
 0x2b5   :  { %vm1131_vm0 = vmor %vm1006_vm15, %vm1106_vm14 }
 0x2b6   :  { %2096 = vmatprep.mubr.msk.f32.mxu1 %vm1131_vm0, %v4305_v44  ;;  %vm1109_vm0 = vcmp.eq.s32.totalorder %v3099_v34, %v1082_v16 }
 0x2b8   :  { %v698_v27 = vpop.permute.xlu1 %697 }
 0x2b9   :  { %vm731_vm1 = vcmp.eq.s32.totalorder %v3099_v34, %v698_v27 }
 0x2bc   :  { %v3978_v24 = vpop.f32.mrb[8].mxu0 }
 0x2bd   :  { %v1535_v11 = vpop.f32.mrb[9].mxu0  ;;  %v798_v39 = vpop.permute.xlu1 %797  ;;  %v2411_v42 = vadd.f32 %v4014_v4, %v3978_v24 }
 0x2be   :  { %vm831_vm2 = vcmp.eq.s32.totalorder %v3099_v34, %v798_v39 }
 0x2bf   :  { %vm856_vm3 = vmor %vm731_vm1, %vm831_vm2  ;;  %v1641_v37 = vmax.f32 %v2411_v42, 0.0 }
 0x2c0   :  { %2097 = vmatmul.mubr.msk.f32.gmra.mrb[14].mxu1 %vm856_vm3, %v4305_v44 }
 0x2c2   :  { %v1076_v60 = vpop.permute.xlu1 %1075 }
 0x2c3   :  { %vm1107_vm5 = vcmp.eq.s32.totalorder %v3099_v34, %v1076_v60 }
 0x2c4   :  { %vm1132_vm6 = vmor %vm1007_vm4, %vm1107_vm5 }
 0x2c5   :  { %2098 = vmatprep.mubr.msk.f32.mxu1 %vm1132_vm6, %v4305_v44  ;;  %vm1010_vm6 = vcmp.eq.s32.totalorder %v3099_v34, %v985_v23 }
 0x2c7   :  { %v701_v52 = vpop.permute.xlu1 %700 }
 0x2c8   :  { %vm732_vm8 = vcmp.eq.s32.totalorder %v3099_v34, %v701_v52 }
 0x2c9   :  { %vm857_vm9 = vmor %vm732_vm8, %vm832_vm7 }
 0x2ca   :  { %2099 = vmatmul.mubr.msk.f32.gmra.mrb[16].mxu1 %vm857_vm9, %v4305_v44  ;;  %vm835_vm9 = vcmp.eq.s32.totalorder %v3099_v34, %v810_v51 }
 0x2cb   :  { %v3991_v59 = vpop.f32.mrb[10].mxu0 }
 0x2cc   :  { %v1540_v17 = vpop.f32.mrb[11].mxu0  ;;  %v979_v3 = vpop.permute.xlu1 %978  ;;  %v2412_v57 = vadd.f32 %v4014_v4, %v3991_v59 }
 0x2cd   :  { %vm1008_vm10 = vcmp.eq.s32.totalorder %v3099_v34, %v979_v3 }
 0x2ce   :  { %v1642_v30 = vmax.f32 %v2412_v57, 0.0 }
 0x2d1   :  { %v1079_v43 = vpop.permute.xlu1 %1078 }
 0x2d2   :  { %vm1108_vm11 = vcmp.eq.s32.totalorder %v3099_v34, %v1079_v43  ;;  %v1389_v43 = vadd.f32 %v4014_v4, %v3771_v10  ;;  %v1399_v10 = vadd.f32 %v4014_v4, %v3786_v32  ;;  %v1409_v32 = vadd.f32 %v4014_v4, %v3810_v29 }
 0x2d3   :  { %vm1133_vm12 = vmor %vm1008_vm10, %vm1108_vm11  ;;  %v1419_v29 = vadd.f32 %v4014_v4, %v3833_v53  ;;  %v1429_v53 = vadd.f32 %v4014_v4, %v3859_v21  ;;  %v1439_v21 = vadd.f32 %v4014_v4, %v3914_v35 }
 0x2d4   :  { %2100 = vmatprep.mubr.msk.f32.mxu1 %vm1133_vm12, %v4305_v44  ;;  %vm2674_vm12 = vmmov 0  }
 0x2d5   :  { %v3996_v28 = vpop.f32.mrb[12].mxu0 }
 0x2d6   :  { %v1545_v6 = vpop.f32.mrb[13].mxu0  ;;  %v804_v36 = vpop.permute.xlu1 %803 }
 0x2d7   :  { %vm833_vm14 = vcmp.eq.s32.totalorder %v3099_v34, %v804_v36 }
 0x2d8   :  { %vm858_vm15 = vmor %vm733_vm13, %vm833_vm14 }
 0x2d9   :  { %2101 = vmatmul.mubr.msk.f32.gmra.mrb[18].mxu1 %vm858_vm15, %v4305_v44 }
 0x2db   :  { %v982_v47 = vpop.permute.xlu1 %981 }
 0x2dc   :  { %vm1009_vm1 = vcmp.eq.s32.totalorder %v3099_v34, %v982_v47  ;;  %v1394_v47 = vadd.f32 %v4014_v4, %v3779_v56  ;;  %v1404_v56 = vadd.f32 %v4014_v4, %v3794_v0  ;;  %v1414_v0 = vadd.f32 %v4014_v4, %v3818_v18 }
 0x2dd   :  { %vm1134_vm2 = vmor %vm1009_vm1, %vm1109_vm0  ;;  %v1424_v18 = vadd.f32 %v4014_v4, %v3840_v12  ;;  %v1434_v12 = vadd.f32 %v4014_v4, %v3883_v14  ;;  %v1444_v14 = vadd.f32 %v4014_v4, %v3936_v33 }
 0x2de   :  { %2102 = vmatprep.mubr.msk.f32.mxu1 %vm1134_vm2, %v4305_v44 }
 0x2e0   :  { %v707_v25 = vpop.permute.xlu1 %706 }
 0x2e1   :  { %vm734_vm3 = vcmp.eq.s32.totalorder %v3099_v34, %v707_v25 }
 0x2e4   :  { %v1548_v7 = vpop.f32.mrb[14].mxu0 }
 0x2e5   :  { %v1550_v62 = vpop.f32.mrb[15].mxu0  ;;  %v807_v41 = vpop.permute.xlu1 %806  ;;  %v2414_v55 = vadd.f32 %v4014_v4, %v1548_v7 }
 0x2e6   :  { %vm834_vm4 = vcmp.eq.s32.totalorder %v3099_v34, %v807_v41 }
 0x2e7   :  { %vm859_vm5 = vmor %vm734_vm3, %vm834_vm4  ;;  %v1644_v8 = vmax.f32 %v2414_v55, 0.0 }
 0x2e8   :  { %2103 = vmatmul.mubr.msk.f32.gmra.mrb[20].mxu1 %vm859_vm5, %v4305_v44 }
 0x2ea   :  { %v1085_v49 = vpop.permute.xlu1 %1084 }
 0x2eb   :  { %vm1110_vm7 = vcmp.eq.s32.totalorder %v3099_v34, %v1085_v49 }
 0x2ec   :  { %vm1135_vm8 = vmor %vm1010_vm6, %vm1110_vm7 }
 0x2ed   :  { %2104 = vmatprep.mubr.msk.f32.mxu1 %vm1135_vm8, %v4305_v44 }
 0x2ef   :  { %v710_v2 = vpop.permute.xlu1 %709 }
 0x2f0   :  { %vm735_vm10 = vcmp.eq.s32.totalorder %v3099_v34, %v710_v2  ;;  %v2409_v34 = vadd.f32 %v4014_v4, %v3965_v48  ;;  %v2413_v48 = vadd.f32 %v4014_v4, %v3996_v28 }
 0x2f1   :  { %vm860_vm11 = vmor %vm735_vm10, %vm835_vm9 }
 0x2f2   :  { %2105 = vmatmul.mubr.msk.f32.gmra.mrb[22].mxu1 %vm860_vm11, %v4305_v44  ;;  %v1639_v44 = vmax.f32 %v2409_v34, 0.0  ;;  %v1643_v58 = vmax.f32 %v2413_v48, 0.0 }
 0x2f3   :  { %v1553_v26 = vpop.f32.mrb[16].mxu0  ;;  %2180 = vmatprep.mubr.msk.f32.mxu1 %vm2674_vm12, %v2675_v20 }
 0x2f4   :  { %v1555_v46 = vpop.f32.mrb[17].mxu0  ;;  %v2415_v15 = vadd.f32 %v4014_v4, %v1553_v26 }
 0x2f6   :  { %2181 = vmatmul.mubr.f32.vlgmr.msra.gmra.mrb[24].mxu1 %v1637_v45  ;;  %v1645_v61 = vmax.f32 %v2415_v15, 0.0 }
 0x2f7   :  { %2183 = vmatprep.mubr.msk.f32.mxu1 %vm2674_vm12, %v2675_v20 }
 0x2fa   :  { %2184 = vmatmul.mubr.f32.gmra.mrb[26].mxu1 %v1638_v19 }
 0x2fb   :  { %2186 = vmatprep.mubr.msk.f32.mxu1 %vm2674_vm12, %v2675_v20 }
 0x2fd   :  { %v1558_v40 = vpop.f32.mrb[18].mxu0 }
 0x2fe   :  { %v1560_v1 = vpop.f32.mrb[19].mxu0  ;;  %2187 = vmatmul.mubr.f32.gmra.mrb[28].mxu1 %v1639_v44  ;;  %v2416_v9 = vadd.f32 %v4014_v4, %v1558_v40 }
 0x2ff   :  { %2189 = vmatprep.mubr.msk.f32.mxu1 %vm2674_vm12, %v2675_v20 }
 0x300   :  { %v1646_v13 = vmax.f32 %v2416_v9, 0.0 }
 0x302   :  { %2190 = vmatmul.mubr.f32.gmra.mrb[30].mxu1 %v1640_v38 }
 0x303   :  { %2192 = vmatprep.mubr.msk.f32.mxu1 %vm2674_vm12, %v2675_v20 }
 0x306   :  { %2193 = vmatmul.mubr.f32.gmra.mrb[32].mxu1 %v1641_v37 }
 0x307   :  { %2195 = vmatprep.mubr.msk.f32.mxu1 %vm2674_vm12, %v2675_v20 }
 0x30a   :  { %2196 = vmatmul.mubr.f32.gmra.mrb[34].mxu1 %v1642_v30 }
 0x30b   :  { %2198 = vmatprep.mubr.msk.f32.mxu1 %vm2674_vm12, %v2675_v20 }
 0x30c   :  { %v1563_v22 = vpop.f32.mrb[20].mxu0 }
 0x30d   :  { %v1565_v31 = vpop.f32.mrb[21].mxu0  ;;  %v2417_v54 = vadd.f32 %v4014_v4, %v1563_v22 }
 0x30e   :  { %2199 = vmatmul.mubr.f32.gmra.mrb[36].mxu1 %v1643_v58 }
 0x30f   :  { %2201 = vmatprep.mubr.msk.f32.mxu1 %vm2674_vm12, %v2675_v20  ;;  %v1647_v24 = vmax.f32 %v2417_v54, 0.0 }
 0x312   :  { %2202 = vmatmul.mubr.f32.gmra.mrb[38].mxu1 %v1644_v8 }
 0x313   :  { %2204 = vmatprep.mubr.msk.f32.mxu1 %vm2674_vm12, %v2675_v20 }
 0x316   :  { %2205 = vmatmul.mubr.f32.gmra.mrb[40].mxu1 %v1645_v61 }
 0x317   :  { %2207 = vmatprep.mubr.msk.f32.mxu1 %vm2674_vm12, %v2675_v20 }
 0x31a   :  { %2208 = vmatmul.mubr.f32.gmra.mrb[42].mxu1 %v1646_v13 }
 0x31b   :  { %v1568_v27 = vpop.f32.mrb[22].mxu0  ;;  %2210 = vmatprep.mubr.msk.f32.mxu1 %vm2674_vm12, %v2675_v20 }
 0x31c   :  { %v2418_v11 = vadd.f32 %v4014_v4, %v1568_v27  ;;  %v1570_v39 = vpop.f32.mrb[23].mxu0 }
 0x31e   :  { %2211 = vmatmul.mubr.f32.gmra.mrb[44].mxu1 %v1647_v24  ;;  %v1648_v60 = vmax.f32 %v2418_v11, 0.0 }
 0x31f   :  { %2213 = vmatprep.mubr.msk.f32.mxu1 %vm2674_vm12, %v2675_v20 }
 0x322   :  { %2214 = vmatmul.mubr.f32.gmra.mrb[46].mxu1 %v1648_v60 }
 0x323   :  { %2216 = vmatprep.mubr.msk.f32.mxu1 %vm2674_vm12, %v2675_v20 }
 0x325   :  { %v1573_v52 = vpop.f32.mrb[24].mxu0 }
 0x326   :  { %v2419_v59 = vadd.f32 %v4014_v4, %v1573_v52  ;;  %v1575_v17 = vpop.f32.mrb[25].mxu0 }
 0x328   :  { %v1649_v3 = vmax.f32 %v2419_v59, 0.0 }
 0x32a   :  { %2217 = vmatmul.mubr.f32.gmra.mrb[48].mxu1 %v1649_v3  ;;  %v4115_v3 = vld [vmem:[%s4221_s4] ss:$0 sm:$0xff] }
 0x32b   :  { %2219 = vmatprep.mubr.msk.f32.mxu1 %vm2674_vm12, %v2675_v20 }
 0x334   :  { %v1578_v28 = vpop.f32.mrb[0].mxu1 }
 0x335   :  { %v1579_v6 = vadd.f32 %v1578_v28, %v1389_v43  ;;  %v1580_v36 = vpop.f32.mrb[1].mxu1 }
 0x337   :  { %v1650_v16 = vmax.f32 %v1579_v6, 0.0 }
 0x339   :  { %2220 = vmatmul.mubr.f32.gmra.mrb[50].mxu1 %v1650_v16 }
 0x33a   :  { %2222 = vmatprep.mubr.msk.f32.mxu1 %vm2674_vm12, %v2675_v20 }
 0x343   :  { %v1583_v25 = vpop.f32.mrb[2].mxu1 }
 0x344   :  { %v1584_v7 = vadd.f32 %v1583_v25, %v1394_v47  ;;  %v1585_v23 = vpop.f32.mrb[3].mxu1 }
 0x346   :  { %v1651_v62 = vmax.f32 %v1584_v7, 0.0 }
 0x348   :  { %2223 = vmatmul.mubr.f32.gmra.mrb[52].mxu1 %v1651_v62 }
 0x349   :  { %2225 = vmatprep.mubr.msk.f32.mxu1 %vm2674_vm12, %v2675_v20 }
 0x34d   :  { %v1588_v41 = vpop.f32.mrb[4].mxu1 }
 0x34e   :  { %v1589_v49 = vadd.f32 %v1588_v41, %v1399_v10  ;;  %v1590_v51 = vpop.f32.mrb[5].mxu1 }
 0x350   :  { %v1652_v2 = vmax.f32 %v1589_v49, 0.0 }
 0x352   :  { %2226 = vmatmul.mubr.f32.gmra.mrb[54].mxu1 %v1652_v2 }
 0x353   :  { %2228 = vmatprep.mubr.msk.f32.mxu1 %vm2674_vm12, %v2675_v20 }
 0x35c   :  { %v1593_v50 = vpop.f32.mrb[6].mxu1 }
 0x35d   :  { %v1594_v26 = vadd.f32 %v1593_v50, %v1404_v56  ;;  %v1595_v45 = vpop.f32.mrb[7].mxu1 }
 0x35f   :  { %v1653_v63 = vmax.f32 %v1594_v26, 0.0 }
 0x361   :  { %2229 = vmatmul.mubr.f32.gmra.mrb[56].mxu1 %v1653_v63 }
 0x362   :  { %2231 = vmatprep.mubr.msk.f32.mxu1 %vm2674_vm12, %v2675_v20 }
 0x36b   :  { %v1598_v46 = vpop.f32.mrb[8].mxu1 }
 0x36c   :  { %v1599_v19 = vadd.f32 %v1598_v46, %v1409_v32  ;;  %v1600_v34 = vpop.f32.mrb[9].mxu1 }
 0x36e   :  { %v1654_v44 = vmax.f32 %v1599_v19, 0.0 }
 0x370   :  { %2232 = vmatmul.mubr.f32.gmra.mrb[58].mxu1 %v1654_v44 }
 0x371   :  { %2234 = vmatprep.mubr.msk.f32.mxu1 %vm2674_vm12, %v2675_v20 }
 0x375   :  { %v1603_v5 = vpop.f32.mrb[10].mxu1 }
 0x376   :  { %v1604_v40 = vadd.f32 %v1603_v5, %v1414_v0  ;;  %v1605_v1 = vpop.f32.mrb[11].mxu1 }
 0x378   :  { %v1655_v38 = vmax.f32 %v1604_v40, 0.0 }
 0x37a   :  { %2235 = vmatmul.mubr.f32.gmra.mrb[60].mxu1 %v1655_v38 }
 0x37b   :  { %2237 = vmatprep.mubr.msk.f32.mxu1 %vm2674_vm12, %v2675_v20 }
 0x384   :  { %v1608_v42 = vpop.f32.mrb[12].mxu1 }
 0x385   :  { %v1609_v37 = vadd.f32 %v1608_v42, %v1419_v29  ;;  %v1610_v57 = vpop.f32.mrb[13].mxu1 }
 0x387   :  { %v1656_v30 = vmax.f32 %v1609_v37, 0.0 }
 0x389   :  { %2238 = vmatmul.mubr.f32.gmra.mrb[62].mxu1 %v1656_v30 }
 0x38a   :  { %2240 = vmatprep.mubr.msk.f32.mxu1 %vm2674_vm12, %v2675_v20 }
 0x393   :  { %v1613_v48 = vpop.f32.mrb[14].mxu1 }
 0x394   :  { %v1614_v58 = vadd.f32 %v1613_v48, %v1424_v18  ;;  %v1615_v55 = vpop.f32.mrb[15].mxu1 }
 0x396   :  { %v1657_v22 = vmax.f32 %v1614_v58, 0.0 }
 0x398   :  { %2241 = vmatmul.mubr.f32.gmra.mrb[64].mxu1 %v1657_v22 }
 0x399   :  { %2243 = vmatprep.mubr.msk.f32.mxu1 %vm2674_vm12, %v2675_v20 }
 0x39d   :  { %v1618_v31 = vpop.f32.mrb[16].mxu1 }
 0x39e   :  { %v1619_v8 = vadd.f32 %v1618_v31, %v1429_v53  ;;  %v1620_v15 = vpop.f32.mrb[17].mxu1 }
 0x3a0   :  { %v1658_v61 = vmax.f32 %v1619_v8, 0.0 }
 0x3a2   :  { %2244 = vmatmul.mubr.f32.gmra.mrb[66].mxu1 %v1658_v61 }
 0x3a3   :  { %2246 = vmatprep.mubr.msk.f32.mxu1 %vm2674_vm12, %v2675_v20 }
 0x3ac   :  { %v1623_v9 = vpop.f32.mrb[18].mxu1 }
 0x3ad   :  { %v1624_v13 = vadd.f32 %v1623_v9, %v1434_v12  ;;  %v1625_v54 = vpop.f32.mrb[19].mxu1 }
 0x3af   :  { %v1659_v27 = vmax.f32 %v1624_v13, 0.0 }
 0x3b1   :  { %2247 = vmatmul.mubr.f32.gmra.mrb[68].mxu1 %v1659_v27 }
 0x3b2   :  { %2249 = vmatprep.mubr.msk.f32.mxu1 %vm2674_vm12, %v2675_v20 }
 0x3bb   :  { %v1628_v24 = vpop.f32.mrb[20].mxu1 }
 0x3bc   :  { %v1629_v11 = vadd.f32 %v1628_v24, %v1439_v21  ;;  %v1630_v39 = vpop.f32.mrb[21].mxu1 }
 0x3be   :  { %v1660_v60 = vmax.f32 %v1629_v11, 0.0 }
 0x3c0   :  { %2250 = vmatmul.mubr.f32.gmra.mrb[70].mxu1 %v1660_v60 }
 0x3c1   :  { %2252 = vmatprep.mubr.msk.f32.mxu1 %vm2674_vm12, %v2675_v20 }
 0x3c5   :  { %v1633_v52 = vpop.f32.mrb[22].mxu1 }
 0x3c6   :  { %v1634_v59 = vadd.f32 %v1633_v52, %v1444_v14  ;;  %v1635_v17 = vpop.f32.mrb[23].mxu1 }
 0x3c8   :  { %v1661_v35 = vmax.f32 %v1634_v59, 0.0 }
 0x3c9   :  { %v1751_v43 = vpop.f32.mrb[24].mxu1 }
 0x3ca   :  { %v1752_v28 = vadd.f32 %v4115_v3, %v1751_v43  ;;  %v2182_v6 = vpop.f32.mrb[25].mxu1  ;;  %2253 = vmatmul.mubr.f32.gmra.mrb[72].mxu1 %v1661_v35 }
 0x3cc   :  { %1875 = vst [vmem:[%s4222_s5] sm:$0xff] %v1752_v28 }
 0x3cd   :  { %v1756_v20 = vpop.f32.mrb[26].mxu1 }
 0x3ce   :  { %v1757_v33 = vadd.f32 %v4115_v3, %v1756_v20  ;;  %v2185_v4 = vpop.f32.mrb[27].mxu1 }
 0x3d0   :  { %1876 = vst [vmem:[%s4222_s5 + $0x8] sm:$0xff] %v1757_v33 }
 0x3d1   :  { %v1761_v36 = vpop.f32.mrb[28].mxu1 }
 0x3d2   :  { %v1762_v16 = vadd.f32 %v4115_v3, %v1761_v36  ;;  %v2188_v47 = vpop.f32.mrb[29].mxu1 }
 0x3d4   :  { %1877 = vst [vmem:[%s4222_s5 + $0x10] sm:$0xff] %v1762_v16 }
 0x3d5   :  { %v1766_v25 = vpop.f32.mrb[30].mxu1 }
 0x3d6   :  { %v1767_v7 = vadd.f32 %v4115_v3, %v1766_v25  ;;  %v2191_v23 = vpop.f32.mrb[31].mxu1 }
 0x3d8   :  { %1878 = vst [vmem:[%s4222_s5 + $0x18] sm:$0xff] %v1767_v7 }
 0x3d9   :  { %v1771_v62 = vpop.f32.mrb[32].mxu1 }
 0x3da   :  { %v1772_v10 = vadd.f32 %v4115_v3, %v1771_v62  ;;  %v2194_v41 = vpop.f32.mrb[33].mxu1 }
 0x3dc   :  { %1879 = vst [vmem:[%s4222_s5 + $0x20] sm:$0xff] %v1772_v10 }
 0x3dd   :  { %v1776_v49 = vpop.f32.mrb[34].mxu1 }
 0x3de   :  { %v1777_v51 = vadd.f32 %v4115_v3, %v1776_v49  ;;  %v2197_v2 = vpop.f32.mrb[35].mxu1 }
 0x3e0   :  { %1880 = vst [vmem:[%s4222_s5 + $0x28] sm:$0xff] %v1777_v51 }
 0x3e1   :  { %v1781_v56 = vpop.f32.mrb[36].mxu1 }
 0x3e2   :  { %v1782_v50 = vadd.f32 %v4115_v3, %v1781_v56  ;;  %v2200_v26 = vpop.f32.mrb[37].mxu1 }
 0x3e4   :  { %1881 = vst [vmem:[%s4222_s5 + $0x30] sm:$0xff] %v1782_v50 }
 0x3e5   :  { %v1786_v45 = vpop.f32.mrb[38].mxu1 }
 0x3e6   :  { %v1787_v63 = vadd.f32 %v4115_v3, %v1786_v45  ;;  %v2203_v32 = vpop.f32.mrb[39].mxu1 }
 0x3e8   :  { %1882 = vst [vmem:[%s4222_s5 + $0x38] sm:$0xff] %v1787_v63 }
 0x3e9   :  { %v1791_v46 = vpop.f32.mrb[40].mxu1 }
 0x3ea   :  { %v1792_v19 = vadd.f32 %v4115_v3, %v1791_v46  ;;  %v2206_v34 = vpop.f32.mrb[41].mxu1 }
 0x3ec   :  { %1883 = vst [vmem:[%s4222_s5 + $0x40] sm:$0xff] %v1792_v19 }
 0x3ed   :  { %v1796_v44 = vpop.f32.mrb[42].mxu1 }
 0x3ee   :  { %v1797_v0 = vadd.f32 %v4115_v3, %v1796_v44  ;;  %v2209_v5 = vpop.f32.mrb[43].mxu1 }
 0x3f0   :  { %1884 = vst [vmem:[%s4222_s5 + $0x48] sm:$0xff] %v1797_v0 }
 0x3f1   :  { %v1801_v40 = vpop.f32.mrb[44].mxu1 }
 0x3f2   :  { %v1802_v1 = vadd.f32 %v4115_v3, %v1801_v40  ;;  %v2212_v38 = vpop.f32.mrb[45].mxu1 }
 0x3f4   :  { %1885 = vst [vmem:[%s4222_s5 + $0x50] sm:$0xff] %v1802_v1 }
 0x3f5   :  { %v1806_v29 = vpop.f32.mrb[46].mxu1 }
 0x3f6   :  { %v1807_v42 = vadd.f32 %v4115_v3, %v1806_v29  ;;  %v2215_v37 = vpop.f32.mrb[47].mxu1 }
 0x3f8   :  { %1886 = vst [vmem:[%s4222_s5 + $0x58] sm:$0xff] %v1807_v42 }
 0x3fd   :  { %v1811_v57 = vpop.f32.mrb[48].mxu1 }
 0x3fe   :  { %v1812_v30 = vadd.f32 %v4115_v3, %v1811_v57  ;;  %v2218_v18 = vpop.f32.mrb[49].mxu1 }
 0x400   :  { %1887 = vst [vmem:[%s4222_s5 + $0x60] sm:$0xff] %v1812_v30 }
 0x40c   :  { %v1816_v48 = vpop.f32.mrb[50].mxu1 }
 0x40d   :  { %v1817_v58 = vadd.f32 %v4115_v3, %v1816_v48  ;;  %v2221_v55 = vpop.f32.mrb[51].mxu1 }
 0x40f   :  { %1888 = vst [vmem:[%s4222_s5 + $0x68] sm:$0xff] %v1817_v58 }
 0x41b   :  { %v1821_v22 = vpop.f32.mrb[52].mxu1 }
 0x41c   :  { %v1822_v53 = vadd.f32 %v4115_v3, %v1821_v22  ;;  %v2224_v31 = vpop.f32.mrb[53].mxu1 }
 0x41e   :  { %1889 = vst [vmem:[%s4222_s5 + $0x70] sm:$0xff] %v1822_v53 }
 0x425   :  { %v1826_v8 = vpop.f32.mrb[54].mxu1 }
 0x426   :  { %v1827_v15 = vadd.f32 %v4115_v3, %v1826_v8  ;;  %v2227_v61 = vpop.f32.mrb[55].mxu1 }
 0x428   :  { %1890 = vst [vmem:[%s4222_s5 + $0x78] sm:$0xff] %v1827_v15 }
 0x434   :  { %v1831_v12 = vpop.f32.mrb[56].mxu1 }
 0x435   :  { %v1832_v9 = vadd.f32 %v4115_v3, %v1831_v12  ;;  %v2230_v13 = vpop.f32.mrb[57].mxu1 }
 0x437   :  { %1891 = vst [vmem:[%s4222_s5 + $0x80] sm:$0xff] %v1832_v9 }
 0x443   :  { %v1836_v54 = vpop.f32.mrb[58].mxu1 }
 0x444   :  { %v1837_v27 = vadd.f32 %v4115_v3, %v1836_v54  ;;  %v2233_v21 = vpop.f32.mrb[59].mxu1 }
 0x446   :  { %1892 = vst [vmem:[%s4222_s5 + $0x88] sm:$0xff] %v1837_v27 }
 0x44d   :  { %v1841_v24 = vpop.f32.mrb[60].mxu1 }
 0x44e   :  { %v1842_v11 = vadd.f32 %v4115_v3, %v1841_v24  ;;  %v2236_v39 = vpop.f32.mrb[61].mxu1 }
 0x450   :  { %1893 = vst [vmem:[%s4222_s5 + $0x90] sm:$0xff] %v1842_v11 }
 0x45c   :  { %v1846_v60 = vpop.f32.mrb[62].mxu1 }
 0x45d   :  { %v1847_v14 = vadd.f32 %v4115_v3, %v1846_v60  ;;  %v2239_v52 = vpop.f32.mrb[63].mxu1 }
 0x45f   :  { %1894 = vst [vmem:[%s4222_s5 + $0x98] sm:$0xff] %v1847_v14 }
 0x46b   :  { %v1851_v59 = vpop.f32.mrb[64].mxu1 }
 0x46c   :  { %v1852_v17 = vadd.f32 %v4115_v3, %v1851_v59  ;;  %v2242_v35 = vpop.f32.mrb[65].mxu1 }
 0x46e   :  { %1895 = vst [vmem:[%s4222_s5 + $0xa0] sm:$0xff] %v1852_v17 }
 0x475   :  { %v1856_v43 = vpop.f32.mrb[66].mxu1 }
 0x476   :  { %v1857_v28 = vadd.f32 %v4115_v3, %v1856_v43  ;;  %v2245_v6 = vpop.f32.mrb[67].mxu1 }
 0x478   :  { %1896 = vst [vmem:[%s4222_s5 + $0xa8] sm:$0xff] %v1857_v28 }
 0x484   :  { %v1861_v20 = vpop.f32.mrb[68].mxu1 }
 0x485   :  { %v1862_v33 = vadd.f32 %v4115_v3, %v1861_v20  ;;  %v2248_v4 = vpop.f32.mrb[69].mxu1 }
 0x487   :  { %1897 = vst [vmem:[%s4222_s5 + $0xb0] sm:$0xff] %v1862_v33 }
 0x493   :  { %v1866_v36 = vpop.f32.mrb[70].mxu1 }
 0x494   :  { %v1867_v16 = vadd.f32 %v4115_v3, %v1866_v36  ;;  %v2251_v47 = vpop.f32.mrb[71].mxu1 }
 0x496   :  { %1898 = vst [vmem:[%s4222_s5 + $0xb8] sm:$0xff] %v1867_v16 }
 0x49d   :  { %v1871_v25 = vpop.f32.mrb[72].mxu1 }
 0x49e   :  { %v1872_v7 = vadd.f32 %v4115_v3, %v1871_v25  ;;  %v2254_v23 = vpop.f32.mrb[73].mxu1 }
 0x4a0   :  { %1899 = vst [vmem:[%s4222_s5 + $0xc0] sm:$0xff] %v1872_v7 }
 0x4a1   :  { %1904 = vsyncpa [#allocation3], 1 }

</bundles_post_ra>
